<compile_context>
chip_gen: v7x
topology: tpu7x:2x2x1
jax: 0.10.0
libtpu: 0.0.40
codegen_flags: <defaults>
</compile_context>

<pallas_src>
import jax
import jax.numpy as jnp
import numpy as np
from jax.experimental import pallas as pl
from jax.experimental.pallas import tpu as pltpu

# ----- small, module-consistent hyperparameters ------------------------------
NUM_NODES = 8
INPUT_DIM = 16
NFEAT = 32
NHID = 16
OUT_CHANNELS = 32
NHEADS = 2
BATCH = 2
LRELU_ALPHA = 0.2  # standard GAT LeakyReLU slope

# packed small-operand layout: [bs | b1 | b2 | b3 | w4_row | b4]  (single f32 row)
OFF_BS = 0
OFF_B1 = OFF_BS + NFEAT
OFF_B2 = OFF_B1 + OUT_CHANNELS
OFF_B3 = OFF_B2 + NFEAT
OFF_W4 = OFF_B3 + NFEAT // 2
OFF_B4 = OFF_W4 + NFEAT // 2
BIAS_LEN = OFF_B4 + 1


# ----- Pallas kernel: one grid step == one batch tile -------------------------
def gat_kernel(x_ref, ws_ref, watt_ref, apack_ref, w1_ref, w2_ref, w3_ref,
               bias_ref, out_ref):
    f32 = jnp.float32
    bf16 = jnp.bfloat16
    tb = out_ref.shape[0]                                             # batch-tile size

    # packed biases / layer_out row (static lane slices of one small operand)
    bs = bias_ref[:, OFF_BS:OFF_BS + NFEAT]                           # (1, 32)
    b1 = bias_ref[:, OFF_B1:OFF_B1 + OUT_CHANNELS]                    # (1, 32)
    b2 = bias_ref[:, OFF_B2:OFF_B2 + NFEAT]                           # (1, 32)
    b3 = bias_ref[:, OFF_B3:OFF_B3 + NFEAT // 2]                      # (1, 16)
    w4r = bias_ref[:, OFF_W4:OFF_W4 + NFEAT // 2]                     # (1, 16)
    b4 = bias_ref[:, OFF_B4:OFF_B4 + 1]                               # (1, 1)

    # ---- batch*node folded projections: three 2-D MXU matmuls (M = tb*N) ----
    x = x_ref[...].astype(bf16)                                       # (tb*N, I)
    lin2 = jnp.dot(x, ws_ref[...], preferred_element_type=f32) + bs   # (tb*N, NFEAT)
    lin2_bf = lin2.astype(bf16)
    wh2 = jnp.dot(lin2_bf, watt_ref[...], preferred_element_type=f32)  # (tb*N, H*NHID)
    wh2_bf = wh2.astype(bf16)
    # packed per-head attention vectors: per head columns [f1_h, f2_h]
    fa2 = jnp.dot(wh2_bf, apack_ref[...], preferred_element_type=f32)  # (tb*N, 2*H)

    # ---- 3-D views (split the leading sublane axis; minor dim untouched) ----
    wh3 = wh2.reshape(tb, NUM_NODES, NHEADS * NHID)                    # f32
    lin3 = lin2.reshape(tb, NUM_NODES, NFEAT)                          # f32
    fa3 = fa2.reshape(tb, NUM_NODES, 2 * NHEADS)                       # f32

    # ---- per-head attention + fused linear1 accumulation ---------------------
    x1 = jnp.zeros((tb, OUT_CHANNELS), f32)
    for h in range(NHEADS):                                            # static unroll
        wh_h = wh3[:, :, h * NHID:(h + 1) * NHID]                      # (tb, N, NHID)
        # e[b,i,j] = f1[b,i] + f2[b,j]  -- VPU broadcast-add, no MXU
        f1 = fa3[:, :, 2 * h:2 * h + 1]                                # (tb, N, 1)
        f2 = fa3[:, :, 2 * h + 1][:, None, :]                          # (tb, 1, N)
        e = f1 + f2                                                    # (tb, N, N)
        e = jnp.where(e > 0, e, LRELU_ALPHA * e)                       # LeakyReLU(0.2)
        e = e - jnp.max(e, axis=-1, keepdims=True)                     # stable softmax
        p = jnp.exp(e)
        att = p * pl.reciprocal(jnp.sum(p, axis=-1, keepdims=True), approx=True)
        hp = jnp.einsum('bij,bjk->bik', att.astype(bf16), wh_h.astype(bf16),
                        preferred_element_type=f32)                    # (tb, N, NHID)
        head = jnp.where(hp > 0, hp, jnp.exp(jnp.minimum(hp, 0.0)) - 1.0)  # safe ELU
        # linear1 contribution: per-(head,node) accumulation against split weights
        # (replaces concat(heads) -> (tb,256) flatten relayout -> big matmul).
        for n in range(NUM_NODES):
            x1 = x1 + jnp.dot(head[:, n, :].astype(bf16),
                              w1_ref[h * NUM_NODES + n],
                              preferred_element_type=f32)              # (tb, OUT)
    x1 = jnp.maximum(x1 + b1, 0.0)                                     # relu(linear1)

    # ---- linear2: per-node accumulation (no (tb,256) flatten relayout) ------
    y1 = jnp.zeros((tb, NFEAT), f32)
    for n in range(NUM_NODES):
        y1 = y1 + jnp.dot(lin3[:, n, :].astype(bf16), w2_ref[n],
                          preferred_element_type=f32)                  # (tb, NFEAT)
    y1 = jnp.maximum(y1 + b2, 0.0)                                     # relu(linear2)

    # ---- linear3 with split weights (no lane concat), bf16 on the MXU -------
    w3a = w3_ref[:OUT_CHANNELS, :]                                     # (OUT, 16)
    w3b = w3_ref[OUT_CHANNELS:, :]                                     # (NFEAT, 16)
    z = jnp.dot(x1.astype(bf16), w3a, preferred_element_type=f32)
    z = z + jnp.dot(y1.astype(bf16), w3b, preferred_element_type=f32)
    z = jnp.maximum(z + b3, 0.0)                                       # (tb, 16)

    # ---- layer_out: VPU multiply + lane reduce (no N=1 MXU matmul / transpose)
    out_ref[...] = jnp.sum(z * w4r, axis=-1, keepdims=True) + b4       # (tb, 1)


# ----- wrapper ----------------------------------------------------------------
def _pick_tb(batch, max_tb):
    """TB must equal B, or be a multiple of 128 dividing B (tile-legal BlockSpecs)."""
    if batch <= max_tb:
        return batch
    tb = (max_tb // 128) * 128
    while tb >= 128:
        if batch % tb == 0:
            return tb
        tb -= 128
    raise ValueError(f"batch={batch} has no multiple-of-128 tile <= {max_tb}")


def gat1nn2vhubert_forward(x, kparams, *, max_tb=256):
    """x: (B, NUM_NODES, INPUT_DIM) f32.  On v7x pick max_tb <= B//2 so G>=2."""
    (ws, watt, apack, w1p, w2p, w3p, bias_pack) = kparams
    B = x.shape[0]
    TB = _pick_tb(B, max_tb)
    G = B // TB
    x2 = x.reshape(B * NUM_NODES, INPUT_DIM)                           # free XLA reshape

    def resident(a):                                                   # grid-resident weight
        nd = a.ndim
        return pl.BlockSpec(a.shape, lambda i, _nd=nd: (0,) * _nd)

    out = pl.pallas_call(
        gat_kernel,
        out_shape=jax.ShapeDtypeStruct((B, 1), jnp.float32),
        grid=(G,),
        in_specs=[
            pl.BlockSpec((TB * NUM_NODES, INPUT_DIM), lambda i: (i, 0)),
            resident(ws), resident(watt), resident(apack),
            resident(w1p), resident(w2p), resident(w3p), resident(bias_pack),
        ],
        out_specs=pl.BlockSpec((TB, 1), lambda i: (i, 0)),
        compiler_params=pltpu.CompilerParams(
            dimension_semantics=("parallel",),
            vmem_limit_bytes=32 * 1024 * 1024),
    )(x2, ws, watt, apack, w1p, w2p, w3p, bias_pack)
    return out


# ----- wrapper-side parameter packing (free XLA ops, done once) ----------------
def pack_kernel_params(params):
    (ws, bs, watt, a1, a2, w1, b1, w2, b2, w3, b3, w4, b4) = params
    bf16 = jnp.bfloat16
    # GAT projection: (H, NFEAT, NHID) -> (NFEAT, H*NHID)
    watt_flat = jnp.transpose(watt, (1, 0, 2)).reshape(NFEAT, NHEADS * NHID)
    # packed attention vectors: per head, column 2h = a1_h, column 2h+1 = a2_h
    a_pack = jnp.zeros((NHEADS * NHID, 2 * NHEADS), jnp.float32)
    for h in range(NHEADS):
        a_pack = a_pack.at[h * NHID:(h + 1) * NHID, 2 * h].set(a1[h])
        a_pack = a_pack.at[h * NHID:(h + 1) * NHID, 2 * h + 1].set(a2[h])
    # linear1 split per (head, node):  (N*H*NHID, OUT) -> (H*N, NHID, OUT)
    w1p = w1.reshape(NUM_NODES, NHEADS, NHID, OUT_CHANNELS)
    w1p = jnp.transpose(w1p, (1, 0, 2, 3)).reshape(
        NHEADS * NUM_NODES, NHID, OUT_CHANNELS)
    # linear2 split per node:  (N*NFEAT, NFEAT) -> (N, NFEAT, NFEAT)
    w2p = w2.reshape(NUM_NODES, NFEAT, NFEAT)
    # biases + layer_out row packed into one small f32 operand
    bias_pack = jnp.concatenate(
        [bs, b1, b2, b3, w4.reshape(-1), b4]).reshape(1, BIAS_LEN)
    return (ws.astype(bf16), watt_flat.astype(bf16), a_pack.astype(bf16),
            w1p.astype(bf16), w2p.astype(bf16), w3.astype(bf16),
            bias_pack.astype(jnp.float32))


# ----- plain-JAX f32 reference (for correctness check) -------------------------
def reference_forward(x, params):
    (ws, bs, watt, a1, a2, w1, b1, w2, b2, w3, b3, w4, b4) = params
    B = x.shape[0]
    lin = jnp.einsum('bni,if->bnf', x, ws) + bs
    heads = []
    for h in range(NHEADS):
        Wh = jnp.einsum('bnf,fk->bnk', lin, watt[h])
        f1 = jnp.einsum('bnk,k->bn', Wh, a1[h])
        f2 = jnp.einsum('bnk,k->bn', Wh, a2[h])
        e = f1[:, :, None] + f2[:, None, :]
        e = jnp.where(e > 0, e, LRELU_ALPHA * e)
        att = jax.nn.softmax(e, axis=-1)
        hp = jnp.einsum('bnm,bmk->bnk', att, Wh)
        heads.append(jnp.where(hp > 0, hp, jnp.exp(jnp.minimum(hp, 0.0)) - 1.0))
    gat = jnp.concatenate(heads, axis=-1)                              # (B, N, H*NHID)
    x1 = jax.nn.relu(gat.reshape(B, -1) @ w1 + b1)
    y1 = jax.nn.relu(lin.reshape(B, -1) @ w2 + b2)
    z = jax.nn.relu(jnp.concatenate([x1, y1], axis=-1) @ w3 + b3)
    return z @ w4 + b4


# ----- deterministic parameter init --------------------------------------------
def init_params(key):
    ks = jax.random.split(key, 14)
    s = 0.1
    ws = jax.random.normal(ks[0], (INPUT_DIM, NFEAT), jnp.float32) * s
    bs = jax.random.normal(ks[1], (NFEAT,), jnp.float32) * s
    watt = jax.random.normal(ks[2], (NHEADS, NFEAT, NHID), jnp.float32) * s
    a1 = jax.random.normal(ks[3], (NHEADS, NHID), jnp.float32) * s
    a2 = jax.random.normal(ks[4], (NHEADS, NHID), jnp.float32) * s
    w1 = jax.random.normal(ks[5], (NUM_NODES * NHEADS * NHID, OUT_CHANNELS), jnp.float32) * s
    b1 = jax.random.normal(ks[6], (OUT_CHANNELS,), jnp.float32) * s
    w2 = jax.random.normal(ks[7], (NUM_NODES * NFEAT, NFEAT), jnp.float32) * s
    b2 = jax.random.normal(ks[8], (NFEAT,), jnp.float32) * s
    w3 = jax.random.normal(ks[9], (OUT_CHANNELS + NFEAT, NFEAT // 2), jnp.float32) * s
    b3 = jax.random.normal(ks[10], (NFEAT // 2,), jnp.float32) * s
    w4 = jax.random.normal(ks[11], (NFEAT // 2, 1), jnp.float32) * s
    b4 = jax.random.normal(ks[12], (1,), jnp.float32) * s
    return (ws, bs, watt, a1, a2, w1, b1, w2, b2, w3, b3, w4, b4)


if __name__ == "__main__":
    key = jax.random.PRNGKey(0)
    kx, kp = jax.random.split(key)
    params = init_params(kp)
    kparams = pack_kernel_params(params)

    # Small-shape run (B=2 -> single grid step, TB == B).
    x = jax.random.normal(kx, (BATCH, NUM_NODES, INPUT_DIM), jnp.float32)
    out = jax.block_until_ready(gat1nn2vhubert_forward(x, kparams))
    ref = reference_forward(x, params)
    np.testing.assert_allclose(np.asarray(out), np.asarray(ref), rtol=2e-2, atol=2e-2)
    assert out.shape == (BATCH, 1)

    # Larger-batch run exercising the tiled path (TB=128, G=2, "parallel" axis).
    xb = jax.random.normal(kx, (256, NUM_NODES, INPUT_DIM), jnp.float32)
    outb = jax.block_until_ready(gat1nn2vhubert_forward(xb, kparams, max_tb=128))
    refb = reference_forward(xb, params)
    np.testing.assert_allclose(np.asarray(outb), np.asarray(refb), rtol=2e-2, atol=2e-2)

    print("KERNEL_OK")
</pallas_src>

<mosaic_0001>
module attributes {stable_mosaic.version = 11 : i64} {
  func.func @gat_kernel(%arg0: i32, %arg1: memref<16x16xf32, #tpu.memory_space<vmem>>, %arg2: memref<16x32xbf16, #tpu.memory_space<vmem>>, %arg3: memref<32x32xbf16, #tpu.memory_space<vmem>>, %arg4: memref<32x4xbf16, #tpu.memory_space<vmem>>, %arg5: memref<16x16x32xbf16, #tpu.memory_space<vmem>>, %arg6: memref<8x32x32xbf16, #tpu.memory_space<vmem>>, %arg7: memref<64x16xbf16, #tpu.memory_space<vmem>>, %arg8: memref<1x129xf32, #tpu.memory_space<vmem>>, %arg9: memref<2x1xf32, #tpu.memory_space<vmem>>) attributes {dimension_semantics = [#tpu.dimension_semantics<parallel>], iteration_bounds = array<i64: 1>, scalar_prefetch = 0 : i64, scratch_operands = 0 : i64, tpu.core_type = #tpu.core_type<tc>, window_params = [{transform_indices = @transform_0, window_bounds = array<i64: 16, 16>}, {pipeline_mode = #tpu.pipeline_mode<synchronous>, transform_indices = @transform_1, window_bounds = array<i64: 16, 32>}, {pipeline_mode = #tpu.pipeline_mode<synchronous>, transform_indices = @transform_2, window_bounds = array<i64: 32, 32>}, {pipeline_mode = #tpu.pipeline_mode<synchronous>, transform_indices = @transform_3, window_bounds = array<i64: 32, 4>}, {pipeline_mode = #tpu.pipeline_mode<synchronous>, transform_indices = @transform_4, window_bounds = array<i64: 16, 16, 32>}, {pipeline_mode = #tpu.pipeline_mode<synchronous>, transform_indices = @transform_5, window_bounds = array<i64: 8, 32, 32>}, {pipeline_mode = #tpu.pipeline_mode<synchronous>, transform_indices = @transform_6, window_bounds = array<i64: 64, 16>}, {pipeline_mode = #tpu.pipeline_mode<synchronous>, transform_indices = @transform_7, window_bounds = array<i64: 1, 129>}, {transform_indices = @transform_8, window_bounds = array<i64: 2, 1>}]} {
    %c0 = arith.constant 0 : index
    %c0_0 = arith.constant 0 : index
    %0 = vector.load %arg8[%c0, %c0_0] : memref<1x129xf32, #tpu.memory_space<vmem>>, vector<1x32xf32>
    %c0_1 = arith.constant 0 : index
    %c32 = arith.constant 32 : index
    %1 = vector.load %arg8[%c0_1, %c32] : memref<1x129xf32, #tpu.memory_space<vmem>>, vector<1x32xf32>
    %c0_2 = arith.constant 0 : index
    %c64 = arith.constant 64 : index
    %2 = vector.load %arg8[%c0_2, %c64] : memref<1x129xf32, #tpu.memory_space<vmem>>, vector<1x32xf32>
    %c0_3 = arith.constant 0 : index
    %c96 = arith.constant 96 : index
    %3 = vector.load %arg8[%c0_3, %c96] : memref<1x129xf32, #tpu.memory_space<vmem>>, vector<1x16xf32>
    %c0_4 = arith.constant 0 : index
    %c112 = arith.constant 112 : index
    %4 = vector.load %arg8[%c0_4, %c112] : memref<1x129xf32, #tpu.memory_space<vmem>>, vector<1x16xf32>
    %c0_5 = arith.constant 0 : index
    %c128 = arith.constant 128 : index
    %5 = vector.load %arg8[%c0_5, %c128] : memref<1x129xf32, #tpu.memory_space<vmem>>, vector<1x1xf32>
    %c0_6 = arith.constant 0 : index
    %c0_7 = arith.constant 0 : index
    %6 = vector.load %arg1[%c0_6, %c0_7] : memref<16x16xf32, #tpu.memory_space<vmem>>, vector<16x16xf32>
    %7 = arith.truncf %6 : vector<16x16xf32> to vector<16x16xbf16>
    %c0_8 = arith.constant 0 : index
    %c0_9 = arith.constant 0 : index
    %8 = vector.load %arg2[%c0_8, %c0_9] : memref<16x32xbf16, #tpu.memory_space<vmem>>, vector<16x32xbf16>
    %cst = arith.constant dense<0.000000e+00> : vector<16x32xf32>
    %9 = tpu.matmul %7, %8, %cst {dimension_numbers = #tpu.dot_dimension_numbers<[1], [0], [0], [1], [0, 0, 1, 1], [], []>} : vector<16x16xbf16>, vector<16x32xbf16>, vector<16x32xf32> -> vector<16x32xf32>
    %10 = vector.broadcast %0 : vector<1x32xf32> to vector<16x32xf32>
    %11 = arith.addf %9, %10 : vector<16x32xf32>
    %12 = arith.truncf %11 : vector<16x32xf32> to vector<16x32xbf16>
    %c0_10 = arith.constant 0 : index
    %c0_11 = arith.constant 0 : index
    %13 = vector.load %arg3[%c0_10, %c0_11] : memref<32x32xbf16, #tpu.memory_space<vmem>>, vector<32x32xbf16>
    %cst_12 = arith.constant dense<0.000000e+00> : vector<16x32xf32>
    %14 = tpu.matmul %12, %13, %cst_12 {dimension_numbers = #tpu.dot_dimension_numbers<[1], [0], [0], [1], [0, 0, 1, 1], [], []>} : vector<16x32xbf16>, vector<32x32xbf16>, vector<16x32xf32> -> vector<16x32xf32>
    %15 = arith.truncf %14 : vector<16x32xf32> to vector<16x32xbf16>
    %c0_13 = arith.constant 0 : index
    %c0_14 = arith.constant 0 : index
    %16 = vector.load %arg4[%c0_13, %c0_14] : memref<32x4xbf16, #tpu.memory_space<vmem>>, vector<32x4xbf16>
    %cst_15 = arith.constant dense<0.000000e+00> : vector<16x4xf32>
    %17 = tpu.matmul %15, %16, %cst_15 {dimension_numbers = #tpu.dot_dimension_numbers<[1], [0], [0], [1], [0, 0, 1, 1], [], []>} : vector<16x32xbf16>, vector<32x4xbf16>, vector<16x4xf32> -> vector<16x4xf32>
    %18 = vector.shape_cast %14 : vector<16x32xf32> to vector<2x8x32xf32>
    %19 = vector.shape_cast %11 : vector<16x32xf32> to vector<2x8x32xf32>
    %20 = vector.shape_cast %17 : vector<16x4xf32> to vector<2x8x4xf32>
    %cst_16 = arith.constant 0.000000e+00 : f32
    %21 = vector.broadcast %cst_16 : f32 to vector<2x32xf32>
    %22 = vector.extract_strided_slice %18 {offsets = [0, 0, 0], sizes = [2, 8, 16], strides = [1, 1, 1]} : vector<2x8x32xf32> to vector<2x8x16xf32>
    %23 = vector.extract_strided_slice %20 {offsets = [0, 0, 0], sizes = [2, 8, 1], strides = [1, 1, 1]} : vector<2x8x4xf32> to vector<2x8x1xf32>
    %24 = vector.extract_strided_slice %20 {offsets = [0, 0, 1], sizes = [2, 8, 1], strides = [1, 1, 1]} : vector<2x8x4xf32> to vector<2x8x1xf32>
    %25 = vector.shape_cast %24 : vector<2x8x1xf32> to vector<2x8xf32>
    %26 = vector.shape_cast %25 : vector<2x8xf32> to vector<2x1x8xf32>
    %27 = vector.broadcast %23 : vector<2x8x1xf32> to vector<2x8x8xf32>
    %28 = vector.broadcast %26 : vector<2x1x8xf32> to vector<2x8x8xf32>
    %29 = arith.addf %27, %28 : vector<2x8x8xf32>
    %cst_17 = arith.constant 0.000000e+00 : f32
    %30 = vector.broadcast %cst_17 : f32 to vector<2x8x8xf32>
    %31 = arith.cmpf ogt, %29, %30 : vector<2x8x8xf32>
    %cst_18 = arith.constant 2.000000e-01 : f32
    %32 = vector.broadcast %cst_18 : f32 to vector<2x8x8xf32>
    %33 = arith.mulf %32, %29 : vector<2x8x8xf32>
    %34 = arith.select %31, %29, %33 : vector<2x8x8xi1>, vector<2x8x8xf32>
    %cst_19 = arith.constant dense<0xFF800000> : vector<2x8xf32>
    %35 = vector.multi_reduction <maximumf>, %34, %cst_19 [2] : vector<2x8x8xf32> to vector<2x8xf32>
    %36 = vector.shape_cast %35 : vector<2x8xf32> to vector<2x8x1xf32>
    %37 = vector.broadcast %36 : vector<2x8x1xf32> to vector<2x8x8xf32>
    %38 = arith.subf %34, %37 : vector<2x8x8xf32>
    %39 = math.exp %38 : vector<2x8x8xf32>
    %cst_20 = arith.constant dense<0.000000e+00> : vector<2x8xf32>
    %40 = vector.multi_reduction <add>, %39, %cst_20 [2] : vector<2x8x8xf32> to vector<2x8xf32>
    %41 = vector.shape_cast %40 : vector<2x8xf32> to vector<2x8x1xf32>
    %42 = tpu.reciprocal %41 {approx = true} : vector<2x8x1xf32> -> vector<2x8x1xf32>
    %43 = vector.broadcast %42 : vector<2x8x1xf32> to vector<2x8x8xf32>
    %44 = arith.mulf %39, %43 : vector<2x8x8xf32>
    %45 = arith.truncf %44 : vector<2x8x8xf32> to vector<2x8x8xbf16>
    %46 = arith.truncf %22 : vector<2x8x16xf32> to vector<2x8x16xbf16>
    "tpu.trace_start"() <{level = 10 : i32, message = "bij,bjk->bik"}> : () -> ()
    %cst_21 = arith.constant dense<0.000000e+00> : vector<2x8x16xf32>
    %47 = tpu.matmul %45, %46, %cst_21 {dimension_numbers = #tpu.dot_dimension_numbers<[2], [1], [1], [2], [0, 0, 0, 1, 1, 2], [0], [0]>} : vector<2x8x8xbf16>, vector<2x8x16xbf16>, vector<2x8x16xf32> -> vector<2x8x16xf32>
    %cst_22 = arith.constant 0.000000e+00 : f32
    "tpu.trace_stop"() : () -> ()
    %48 = vector.broadcast %cst_22 : f32 to vector<2x8x16xf32>
    %49 = arith.cmpf ogt, %47, %48 : vector<2x8x16xf32>
    %cst_23 = arith.constant 0.000000e+00 : f32
    %50 = vector.broadcast %cst_23 : f32 to vector<2x8x16xf32>
    %51 = arith.minimumf %47, %50 : vector<2x8x16xf32>
    %52 = math.exp %51 : vector<2x8x16xf32>
    %cst_24 = arith.constant 1.000000e+00 : f32
    %53 = vector.broadcast %cst_24 : f32 to vector<2x8x16xf32>
    %54 = arith.subf %52, %53 : vector<2x8x16xf32>
    %55 = arith.select %49, %47, %54 : vector<2x8x16xi1>, vector<2x8x16xf32>
    %56 = vector.extract_strided_slice %55 {offsets = [0, 0, 0], sizes = [2, 1, 16], strides = [1, 1, 1]} : vector<2x8x16xf32> to vector<2x1x16xf32>
    %57 = vector.shape_cast %56 : vector<2x1x16xf32> to vector<2x16xf32>
    %58 = arith.truncf %57 : vector<2x16xf32> to vector<2x16xbf16>
    %c0_25 = arith.constant 0 : index
    %c0_26 = arith.constant 0 : index
    %c0_27 = arith.constant 0 : index
    %59 = vector.load %arg5[%c0_25, %c0_26, %c0_27] : memref<16x16x32xbf16, #tpu.memory_space<vmem>>, vector<1x16x32xbf16>
    %60 = vector.shape_cast %59 : vector<1x16x32xbf16> to vector<16x32xbf16>
    %cst_28 = arith.constant dense<0.000000e+00> : vector<2x32xf32>
    %61 = tpu.matmul %58, %60, %cst_28 {dimension_numbers = #tpu.dot_dimension_numbers<[1], [0], [0], [1], [0, 0, 1, 1], [], []>} : vector<2x16xbf16>, vector<16x32xbf16>, vector<2x32xf32> -> vector<2x32xf32>
    %62 = arith.addf %21, %61 : vector<2x32xf32>
    %63 = vector.extract_strided_slice %55 {offsets = [0, 1, 0], sizes = [2, 1, 16], strides = [1, 1, 1]} : vector<2x8x16xf32> to vector<2x1x16xf32>
    %64 = vector.shape_cast %63 : vector<2x1x16xf32> to vector<2x16xf32>
    %65 = arith.truncf %64 : vector<2x16xf32> to vector<2x16xbf16>
    %c1 = arith.constant 1 : index
    %c0_29 = arith.constant 0 : index
    %c0_30 = arith.constant 0 : index
    %66 = vector.load %arg5[%c1, %c0_29, %c0_30] : memref<16x16x32xbf16, #tpu.memory_space<vmem>>, vector<1x16x32xbf16>
    %67 = vector.shape_cast %66 : vector<1x16x32xbf16> to vector<16x32xbf16>
    %cst_31 = arith.constant dense<0.000000e+00> : vector<2x32xf32>
    %68 = tpu.matmul %65, %67, %cst_31 {dimension_numbers = #tpu.dot_dimension_numbers<[1], [0], [0], [1], [0, 0, 1, 1], [], []>} : vector<2x16xbf16>, vector<16x32xbf16>, vector<2x32xf32> -> vector<2x32xf32>
    %69 = arith.addf %62, %68 : vector<2x32xf32>
    %70 = vector.extract_strided_slice %55 {offsets = [0, 2, 0], sizes = [2, 1, 16], strides = [1, 1, 1]} : vector<2x8x16xf32> to vector<2x1x16xf32>
    %71 = vector.shape_cast %70 : vector<2x1x16xf32> to vector<2x16xf32>
    %72 = arith.truncf %71 : vector<2x16xf32> to vector<2x16xbf16>
    %c2 = arith.constant 2 : index
    %c0_32 = arith.constant 0 : index
    %c0_33 = arith.constant 0 : index
    %73 = vector.load %arg5[%c2, %c0_32, %c0_33] : memref<16x16x32xbf16, #tpu.memory_space<vmem>>, vector<1x16x32xbf16>
    %74 = vector.shape_cast %73 : vector<1x16x32xbf16> to vector<16x32xbf16>
    %cst_34 = arith.constant dense<0.000000e+00> : vector<2x32xf32>
    %75 = tpu.matmul %72, %74, %cst_34 {dimension_numbers = #tpu.dot_dimension_numbers<[1], [0], [0], [1], [0, 0, 1, 1], [], []>} : vector<2x16xbf16>, vector<16x32xbf16>, vector<2x32xf32> -> vector<2x32xf32>
    %76 = arith.addf %69, %75 : vector<2x32xf32>
    %77 = vector.extract_strided_slice %55 {offsets = [0, 3, 0], sizes = [2, 1, 16], strides = [1, 1, 1]} : vector<2x8x16xf32> to vector<2x1x16xf32>
    %78 = vector.shape_cast %77 : vector<2x1x16xf32> to vector<2x16xf32>
    %79 = arith.truncf %78 : vector<2x16xf32> to vector<2x16xbf16>
    %c3 = arith.constant 3 : index
    %c0_35 = arith.constant 0 : index
    %c0_36 = arith.constant 0 : index
    %80 = vector.load %arg5[%c3, %c0_35, %c0_36] : memref<16x16x32xbf16, #tpu.memory_space<vmem>>, vector<1x16x32xbf16>
    %81 = vector.shape_cast %80 : vector<1x16x32xbf16> to vector<16x32xbf16>
    %cst_37 = arith.constant dense<0.000000e+00> : vector<2x32xf32>
    %82 = tpu.matmul %79, %81, %cst_37 {dimension_numbers = #tpu.dot_dimension_numbers<[1], [0], [0], [1], [0, 0, 1, 1], [], []>} : vector<2x16xbf16>, vector<16x32xbf16>, vector<2x32xf32> -> vector<2x32xf32>
    %83 = arith.addf %76, %82 : vector<2x32xf32>
    %84 = vector.extract_strided_slice %55 {offsets = [0, 4, 0], sizes = [2, 1, 16], strides = [1, 1, 1]} : vector<2x8x16xf32> to vector<2x1x16xf32>
    %85 = vector.shape_cast %84 : vector<2x1x16xf32> to vector<2x16xf32>
    %86 = arith.truncf %85 : vector<2x16xf32> to vector<2x16xbf16>
    %c4 = arith.constant 4 : index
    %c0_38 = arith.constant 0 : index
    %c0_39 = arith.constant 0 : index
    %87 = vector.load %arg5[%c4, %c0_38, %c0_39] : memref<16x16x32xbf16, #tpu.memory_space<vmem>>, vector<1x16x32xbf16>
    %88 = vector.shape_cast %87 : vector<1x16x32xbf16> to vector<16x32xbf16>
    %cst_40 = arith.constant dense<0.000000e+00> : vector<2x32xf32>
    %89 = tpu.matmul %86, %88, %cst_40 {dimension_numbers = #tpu.dot_dimension_numbers<[1], [0], [0], [1], [0, 0, 1, 1], [], []>} : vector<2x16xbf16>, vector<16x32xbf16>, vector<2x32xf32> -> vector<2x32xf32>
    %90 = arith.addf %83, %89 : vector<2x32xf32>
    %91 = vector.extract_strided_slice %55 {offsets = [0, 5, 0], sizes = [2, 1, 16], strides = [1, 1, 1]} : vector<2x8x16xf32> to vector<2x1x16xf32>
    %92 = vector.shape_cast %91 : vector<2x1x16xf32> to vector<2x16xf32>
    %93 = arith.truncf %92 : vector<2x16xf32> to vector<2x16xbf16>
    %c5 = arith.constant 5 : index
    %c0_41 = arith.constant 0 : index
    %c0_42 = arith.constant 0 : index
    %94 = vector.load %arg5[%c5, %c0_41, %c0_42] : memref<16x16x32xbf16, #tpu.memory_space<vmem>>, vector<1x16x32xbf16>
    %95 = vector.shape_cast %94 : vector<1x16x32xbf16> to vector<16x32xbf16>
    %cst_43 = arith.constant dense<0.000000e+00> : vector<2x32xf32>
    %96 = tpu.matmul %93, %95, %cst_43 {dimension_numbers = #tpu.dot_dimension_numbers<[1], [0], [0], [1], [0, 0, 1, 1], [], []>} : vector<2x16xbf16>, vector<16x32xbf16>, vector<2x32xf32> -> vector<2x32xf32>
    %97 = arith.addf %90, %96 : vector<2x32xf32>
    %98 = vector.extract_strided_slice %55 {offsets = [0, 6, 0], sizes = [2, 1, 16], strides = [1, 1, 1]} : vector<2x8x16xf32> to vector<2x1x16xf32>
    %99 = vector.shape_cast %98 : vector<2x1x16xf32> to vector<2x16xf32>
    %100 = arith.truncf %99 : vector<2x16xf32> to vector<2x16xbf16>
    %c6 = arith.constant 6 : index
    %c0_44 = arith.constant 0 : index
    %c0_45 = arith.constant 0 : index
    %101 = vector.load %arg5[%c6, %c0_44, %c0_45] : memref<16x16x32xbf16, #tpu.memory_space<vmem>>, vector<1x16x32xbf16>
    %102 = vector.shape_cast %101 : vector<1x16x32xbf16> to vector<16x32xbf16>
    %cst_46 = arith.constant dense<0.000000e+00> : vector<2x32xf32>
    %103 = tpu.matmul %100, %102, %cst_46 {dimension_numbers = #tpu.dot_dimension_numbers<[1], [0], [0], [1], [0, 0, 1, 1], [], []>} : vector<2x16xbf16>, vector<16x32xbf16>, vector<2x32xf32> -> vector<2x32xf32>
    %104 = arith.addf %97, %103 : vector<2x32xf32>
    %105 = vector.extract_strided_slice %55 {offsets = [0, 7, 0], sizes = [2, 1, 16], strides = [1, 1, 1]} : vector<2x8x16xf32> to vector<2x1x16xf32>
    %106 = vector.shape_cast %105 : vector<2x1x16xf32> to vector<2x16xf32>
    %107 = arith.truncf %106 : vector<2x16xf32> to vector<2x16xbf16>
    %c7 = arith.constant 7 : index
    %c0_47 = arith.constant 0 : index
    %c0_48 = arith.constant 0 : index
    %108 = vector.load %arg5[%c7, %c0_47, %c0_48] : memref<16x16x32xbf16, #tpu.memory_space<vmem>>, vector<1x16x32xbf16>
    %109 = vector.shape_cast %108 : vector<1x16x32xbf16> to vector<16x32xbf16>
    %cst_49 = arith.constant dense<0.000000e+00> : vector<2x32xf32>
    %110 = tpu.matmul %107, %109, %cst_49 {dimension_numbers = #tpu.dot_dimension_numbers<[1], [0], [0], [1], [0, 0, 1, 1], [], []>} : vector<2x16xbf16>, vector<16x32xbf16>, vector<2x32xf32> -> vector<2x32xf32>
    %111 = arith.addf %104, %110 : vector<2x32xf32>
    %112 = vector.extract_strided_slice %18 {offsets = [0, 0, 16], sizes = [2, 8, 16], strides = [1, 1, 1]} : vector<2x8x32xf32> to vector<2x8x16xf32>
    %113 = vector.extract_strided_slice %20 {offsets = [0, 0, 2], sizes = [2, 8, 1], strides = [1, 1, 1]} : vector<2x8x4xf32> to vector<2x8x1xf32>
    %114 = vector.extract_strided_slice %20 {offsets = [0, 0, 3], sizes = [2, 8, 1], strides = [1, 1, 1]} : vector<2x8x4xf32> to vector<2x8x1xf32>
    %115 = vector.shape_cast %114 : vector<2x8x1xf32> to vector<2x8xf32>
    %116 = vector.shape_cast %115 : vector<2x8xf32> to vector<2x1x8xf32>
    %117 = vector.broadcast %113 : vector<2x8x1xf32> to vector<2x8x8xf32>
    %118 = vector.broadcast %116 : vector<2x1x8xf32> to vector<2x8x8xf32>
    %119 = arith.addf %117, %118 : vector<2x8x8xf32>
    %cst_50 = arith.constant 0.000000e+00 : f32
    %120 = vector.broadcast %cst_50 : f32 to vector<2x8x8xf32>
    %121 = arith.cmpf ogt, %119, %120 : vector<2x8x8xf32>
    %cst_51 = arith.constant 2.000000e-01 : f32
    %122 = vector.broadcast %cst_51 : f32 to vector<2x8x8xf32>
    %123 = arith.mulf %122, %119 : vector<2x8x8xf32>
    %124 = arith.select %121, %119, %123 : vector<2x8x8xi1>, vector<2x8x8xf32>
    %cst_52 = arith.constant dense<0xFF800000> : vector<2x8xf32>
    %125 = vector.multi_reduction <maximumf>, %124, %cst_52 [2] : vector<2x8x8xf32> to vector<2x8xf32>
    %126 = vector.shape_cast %125 : vector<2x8xf32> to vector<2x8x1xf32>
    %127 = vector.broadcast %126 : vector<2x8x1xf32> to vector<2x8x8xf32>
    %128 = arith.subf %124, %127 : vector<2x8x8xf32>
    %129 = math.exp %128 : vector<2x8x8xf32>
    %cst_53 = arith.constant dense<0.000000e+00> : vector<2x8xf32>
    %130 = vector.multi_reduction <add>, %129, %cst_53 [2] : vector<2x8x8xf32> to vector<2x8xf32>
    %131 = vector.shape_cast %130 : vector<2x8xf32> to vector<2x8x1xf32>
    %132 = tpu.reciprocal %131 {approx = true} : vector<2x8x1xf32> -> vector<2x8x1xf32>
    %133 = vector.broadcast %132 : vector<2x8x1xf32> to vector<2x8x8xf32>
    %134 = arith.mulf %129, %133 : vector<2x8x8xf32>
    %135 = arith.truncf %134 : vector<2x8x8xf32> to vector<2x8x8xbf16>
    %136 = arith.truncf %112 : vector<2x8x16xf32> to vector<2x8x16xbf16>
    "tpu.trace_start"() <{level = 10 : i32, message = "bij,bjk->bik"}> : () -> ()
    %cst_54 = arith.constant dense<0.000000e+00> : vector<2x8x16xf32>
    %137 = tpu.matmul %135, %136, %cst_54 {dimension_numbers = #tpu.dot_dimension_numbers<[2], [1], [1], [2], [0, 0, 0, 1, 1, 2], [0], [0]>} : vector<2x8x8xbf16>, vector<2x8x16xbf16>, vector<2x8x16xf32> -> vector<2x8x16xf32>
    %cst_55 = arith.constant 0.000000e+00 : f32
    "tpu.trace_stop"() : () -> ()
    %138 = vector.broadcast %cst_55 : f32 to vector<2x8x16xf32>
    %139 = arith.cmpf ogt, %137, %138 : vector<2x8x16xf32>
    %cst_56 = arith.constant 0.000000e+00 : f32
    %140 = vector.broadcast %cst_56 : f32 to vector<2x8x16xf32>
    %141 = arith.minimumf %137, %140 : vector<2x8x16xf32>
    %142 = math.exp %141 : vector<2x8x16xf32>
    %cst_57 = arith.constant 1.000000e+00 : f32
    %143 = vector.broadcast %cst_57 : f32 to vector<2x8x16xf32>
    %144 = arith.subf %142, %143 : vector<2x8x16xf32>
    %145 = arith.select %139, %137, %144 : vector<2x8x16xi1>, vector<2x8x16xf32>
    %146 = vector.extract_strided_slice %145 {offsets = [0, 0, 0], sizes = [2, 1, 16], strides = [1, 1, 1]} : vector<2x8x16xf32> to vector<2x1x16xf32>
    %147 = vector.shape_cast %146 : vector<2x1x16xf32> to vector<2x16xf32>
    %148 = arith.truncf %147 : vector<2x16xf32> to vector<2x16xbf16>
    %c8 = arith.constant 8 : index
    %c0_58 = arith.constant 0 : index
    %c0_59 = arith.constant 0 : index
    %149 = vector.load %arg5[%c8, %c0_58, %c0_59] : memref<16x16x32xbf16, #tpu.memory_space<vmem>>, vector<1x16x32xbf16>
    %150 = vector.shape_cast %149 : vector<1x16x32xbf16> to vector<16x32xbf16>
    %cst_60 = arith.constant dense<0.000000e+00> : vector<2x32xf32>
    %151 = tpu.matmul %148, %150, %cst_60 {dimension_numbers = #tpu.dot_dimension_numbers<[1], [0], [0], [1], [0, 0, 1, 1], [], []>} : vector<2x16xbf16>, vector<16x32xbf16>, vector<2x32xf32> -> vector<2x32xf32>
    %152 = arith.addf %111, %151 : vector<2x32xf32>
    %153 = vector.extract_strided_slice %145 {offsets = [0, 1, 0], sizes = [2, 1, 16], strides = [1, 1, 1]} : vector<2x8x16xf32> to vector<2x1x16xf32>
    %154 = vector.shape_cast %153 : vector<2x1x16xf32> to vector<2x16xf32>
    %155 = arith.truncf %154 : vector<2x16xf32> to vector<2x16xbf16>
    %c9 = arith.constant 9 : index
    %c0_61 = arith.constant 0 : index
    %c0_62 = arith.constant 0 : index
    %156 = vector.load %arg5[%c9, %c0_61, %c0_62] : memref<16x16x32xbf16, #tpu.memory_space<vmem>>, vector<1x16x32xbf16>
    %157 = vector.shape_cast %156 : vector<1x16x32xbf16> to vector<16x32xbf16>
    %cst_63 = arith.constant dense<0.000000e+00> : vector<2x32xf32>
    %158 = tpu.matmul %155, %157, %cst_63 {dimension_numbers = #tpu.dot_dimension_numbers<[1], [0], [0], [1], [0, 0, 1, 1], [], []>} : vector<2x16xbf16>, vector<16x32xbf16>, vector<2x32xf32> -> vector<2x32xf32>
    %159 = arith.addf %152, %158 : vector<2x32xf32>
    %160 = vector.extract_strided_slice %145 {offsets = [0, 2, 0], sizes = [2, 1, 16], strides = [1, 1, 1]} : vector<2x8x16xf32> to vector<2x1x16xf32>
    %161 = vector.shape_cast %160 : vector<2x1x16xf32> to vector<2x16xf32>
    %162 = arith.truncf %161 : vector<2x16xf32> to vector<2x16xbf16>
    %c10 = arith.constant 10 : index
    %c0_64 = arith.constant 0 : index
    %c0_65 = arith.constant 0 : index
    %163 = vector.load %arg5[%c10, %c0_64, %c0_65] : memref<16x16x32xbf16, #tpu.memory_space<vmem>>, vector<1x16x32xbf16>
    %164 = vector.shape_cast %163 : vector<1x16x32xbf16> to vector<16x32xbf16>
    %cst_66 = arith.constant dense<0.000000e+00> : vector<2x32xf32>
    %165 = tpu.matmul %162, %164, %cst_66 {dimension_numbers = #tpu.dot_dimension_numbers<[1], [0], [0], [1], [0, 0, 1, 1], [], []>} : vector<2x16xbf16>, vector<16x32xbf16>, vector<2x32xf32> -> vector<2x32xf32>
    %166 = arith.addf %159, %165 : vector<2x32xf32>
    %167 = vector.extract_strided_slice %145 {offsets = [0, 3, 0], sizes = [2, 1, 16], strides = [1, 1, 1]} : vector<2x8x16xf32> to vector<2x1x16xf32>
    %168 = vector.shape_cast %167 : vector<2x1x16xf32> to vector<2x16xf32>
    %169 = arith.truncf %168 : vector<2x16xf32> to vector<2x16xbf16>
    %c11 = arith.constant 11 : index
    %c0_67 = arith.constant 0 : index
    %c0_68 = arith.constant 0 : index
    %170 = vector.load %arg5[%c11, %c0_67, %c0_68] : memref<16x16x32xbf16, #tpu.memory_space<vmem>>, vector<1x16x32xbf16>
    %171 = vector.shape_cast %170 : vector<1x16x32xbf16> to vector<16x32xbf16>
    %cst_69 = arith.constant dense<0.000000e+00> : vector<2x32xf32>
    %172 = tpu.matmul %169, %171, %cst_69 {dimension_numbers = #tpu.dot_dimension_numbers<[1], [0], [0], [1], [0, 0, 1, 1], [], []>} : vector<2x16xbf16>, vector<16x32xbf16>, vector<2x32xf32> -> vector<2x32xf32>
    %173 = arith.addf %166, %172 : vector<2x32xf32>
    %174 = vector.extract_strided_slice %145 {offsets = [0, 4, 0], sizes = [2, 1, 16], strides = [1, 1, 1]} : vector<2x8x16xf32> to vector<2x1x16xf32>
    %175 = vector.shape_cast %174 : vector<2x1x16xf32> to vector<2x16xf32>
    %176 = arith.truncf %175 : vector<2x16xf32> to vector<2x16xbf16>
    %c12 = arith.constant 12 : index
    %c0_70 = arith.constant 0 : index
    %c0_71 = arith.constant 0 : index
    %177 = vector.load %arg5[%c12, %c0_70, %c0_71] : memref<16x16x32xbf16, #tpu.memory_space<vmem>>, vector<1x16x32xbf16>
    %178 = vector.shape_cast %177 : vector<1x16x32xbf16> to vector<16x32xbf16>
    %cst_72 = arith.constant dense<0.000000e+00> : vector<2x32xf32>
    %179 = tpu.matmul %176, %178, %cst_72 {dimension_numbers = #tpu.dot_dimension_numbers<[1], [0], [0], [1], [0, 0, 1, 1], [], []>} : vector<2x16xbf16>, vector<16x32xbf16>, vector<2x32xf32> -> vector<2x32xf32>
    %180 = arith.addf %173, %179 : vector<2x32xf32>
    %181 = vector.extract_strided_slice %145 {offsets = [0, 5, 0], sizes = [2, 1, 16], strides = [1, 1, 1]} : vector<2x8x16xf32> to vector<2x1x16xf32>
    %182 = vector.shape_cast %181 : vector<2x1x16xf32> to vector<2x16xf32>
    %183 = arith.truncf %182 : vector<2x16xf32> to vector<2x16xbf16>
    %c13 = arith.constant 13 : index
    %c0_73 = arith.constant 0 : index
    %c0_74 = arith.constant 0 : index
    %184 = vector.load %arg5[%c13, %c0_73, %c0_74] : memref<16x16x32xbf16, #tpu.memory_space<vmem>>, vector<1x16x32xbf16>
    %185 = vector.shape_cast %184 : vector<1x16x32xbf16> to vector<16x32xbf16>
    %cst_75 = arith.constant dense<0.000000e+00> : vector<2x32xf32>
    %186 = tpu.matmul %183, %185, %cst_75 {dimension_numbers = #tpu.dot_dimension_numbers<[1], [0], [0], [1], [0, 0, 1, 1], [], []>} : vector<2x16xbf16>, vector<16x32xbf16>, vector<2x32xf32> -> vector<2x32xf32>
    %187 = arith.addf %180, %186 : vector<2x32xf32>
    %188 = vector.extract_strided_slice %145 {offsets = [0, 6, 0], sizes = [2, 1, 16], strides = [1, 1, 1]} : vector<2x8x16xf32> to vector<2x1x16xf32>
    %189 = vector.shape_cast %188 : vector<2x1x16xf32> to vector<2x16xf32>
    %190 = arith.truncf %189 : vector<2x16xf32> to vector<2x16xbf16>
    %c14 = arith.constant 14 : index
    %c0_76 = arith.constant 0 : index
    %c0_77 = arith.constant 0 : index
    %191 = vector.load %arg5[%c14, %c0_76, %c0_77] : memref<16x16x32xbf16, #tpu.memory_space<vmem>>, vector<1x16x32xbf16>
    %192 = vector.shape_cast %191 : vector<1x16x32xbf16> to vector<16x32xbf16>
    %cst_78 = arith.constant dense<0.000000e+00> : vector<2x32xf32>
    %193 = tpu.matmul %190, %192, %cst_78 {dimension_numbers = #tpu.dot_dimension_numbers<[1], [0], [0], [1], [0, 0, 1, 1], [], []>} : vector<2x16xbf16>, vector<16x32xbf16>, vector<2x32xf32> -> vector<2x32xf32>
    %194 = arith.addf %187, %193 : vector<2x32xf32>
    %195 = vector.extract_strided_slice %145 {offsets = [0, 7, 0], sizes = [2, 1, 16], strides = [1, 1, 1]} : vector<2x8x16xf32> to vector<2x1x16xf32>
    %196 = vector.shape_cast %195 : vector<2x1x16xf32> to vector<2x16xf32>
    %197 = arith.truncf %196 : vector<2x16xf32> to vector<2x16xbf16>
    %c15 = arith.constant 15 : index
    %c0_79 = arith.constant 0 : index
    %c0_80 = arith.constant 0 : index
    %198 = vector.load %arg5[%c15, %c0_79, %c0_80] : memref<16x16x32xbf16, #tpu.memory_space<vmem>>, vector<1x16x32xbf16>
    %199 = vector.shape_cast %198 : vector<1x16x32xbf16> to vector<16x32xbf16>
    %cst_81 = arith.constant dense<0.000000e+00> : vector<2x32xf32>
    %200 = tpu.matmul %197, %199, %cst_81 {dimension_numbers = #tpu.dot_dimension_numbers<[1], [0], [0], [1], [0, 0, 1, 1], [], []>} : vector<2x16xbf16>, vector<16x32xbf16>, vector<2x32xf32> -> vector<2x32xf32>
    %201 = arith.addf %194, %200 : vector<2x32xf32>
    %202 = vector.broadcast %1 : vector<1x32xf32> to vector<2x32xf32>
    %203 = arith.addf %201, %202 : vector<2x32xf32>
    %cst_82 = arith.constant 0.000000e+00 : f32
    %204 = vector.broadcast %cst_82 : f32 to vector<2x32xf32>
    %205 = arith.maximumf %203, %204 : vector<2x32xf32>
    %cst_83 = arith.constant 0.000000e+00 : f32
    %206 = vector.broadcast %cst_83 : f32 to vector<2x32xf32>
    %207 = vector.extract_strided_slice %19 {offsets = [0, 0, 0], sizes = [2, 1, 32], strides = [1, 1, 1]} : vector<2x8x32xf32> to vector<2x1x32xf32>
    %208 = vector.shape_cast %207 : vector<2x1x32xf32> to vector<2x32xf32>
    %209 = arith.truncf %208 : vector<2x32xf32> to vector<2x32xbf16>
    %c0_84 = arith.constant 0 : index
    %c0_85 = arith.constant 0 : index
    %c0_86 = arith.constant 0 : index
    %210 = vector.load %arg6[%c0_84, %c0_85, %c0_86] : memref<8x32x32xbf16, #tpu.memory_space<vmem>>, vector<1x32x32xbf16>
    %211 = vector.shape_cast %210 : vector<1x32x32xbf16> to vector<32x32xbf16>
    %cst_87 = arith.constant dense<0.000000e+00> : vector<2x32xf32>
    %212 = tpu.matmul %209, %211, %cst_87 {dimension_numbers = #tpu.dot_dimension_numbers<[1], [0], [0], [1], [0, 0, 1, 1], [], []>} : vector<2x32xbf16>, vector<32x32xbf16>, vector<2x32xf32> -> vector<2x32xf32>
    %213 = arith.addf %206, %212 : vector<2x32xf32>
    %214 = vector.extract_strided_slice %19 {offsets = [0, 1, 0], sizes = [2, 1, 32], strides = [1, 1, 1]} : vector<2x8x32xf32> to vector<2x1x32xf32>
    %215 = vector.shape_cast %214 : vector<2x1x32xf32> to vector<2x32xf32>
    %216 = arith.truncf %215 : vector<2x32xf32> to vector<2x32xbf16>
    %c1_88 = arith.constant 1 : index
    %c0_89 = arith.constant 0 : index
    %c0_90 = arith.constant 0 : index
    %217 = vector.load %arg6[%c1_88, %c0_89, %c0_90] : memref<8x32x32xbf16, #tpu.memory_space<vmem>>, vector<1x32x32xbf16>
    %218 = vector.shape_cast %217 : vector<1x32x32xbf16> to vector<32x32xbf16>
    %cst_91 = arith.constant dense<0.000000e+00> : vector<2x32xf32>
    %219 = tpu.matmul %216, %218, %cst_91 {dimension_numbers = #tpu.dot_dimension_numbers<[1], [0], [0], [1], [0, 0, 1, 1], [], []>} : vector<2x32xbf16>, vector<32x32xbf16>, vector<2x32xf32> -> vector<2x32xf32>
    %220 = arith.addf %213, %219 : vector<2x32xf32>
    %221 = vector.extract_strided_slice %19 {offsets = [0, 2, 0], sizes = [2, 1, 32], strides = [1, 1, 1]} : vector<2x8x32xf32> to vector<2x1x32xf32>
    %222 = vector.shape_cast %221 : vector<2x1x32xf32> to vector<2x32xf32>
    %223 = arith.truncf %222 : vector<2x32xf32> to vector<2x32xbf16>
    %c2_92 = arith.constant 2 : index
    %c0_93 = arith.constant 0 : index
    %c0_94 = arith.constant 0 : index
    %224 = vector.load %arg6[%c2_92, %c0_93, %c0_94] : memref<8x32x32xbf16, #tpu.memory_space<vmem>>, vector<1x32x32xbf16>
    %225 = vector.shape_cast %224 : vector<1x32x32xbf16> to vector<32x32xbf16>
    %cst_95 = arith.constant dense<0.000000e+00> : vector<2x32xf32>
    %226 = tpu.matmul %223, %225, %cst_95 {dimension_numbers = #tpu.dot_dimension_numbers<[1], [0], [0], [1], [0, 0, 1, 1], [], []>} : vector<2x32xbf16>, vector<32x32xbf16>, vector<2x32xf32> -> vector<2x32xf32>
    %227 = arith.addf %220, %226 : vector<2x32xf32>
    %228 = vector.extract_strided_slice %19 {offsets = [0, 3, 0], sizes = [2, 1, 32], strides = [1, 1, 1]} : vector<2x8x32xf32> to vector<2x1x32xf32>
    %229 = vector.shape_cast %228 : vector<2x1x32xf32> to vector<2x32xf32>
    %230 = arith.truncf %229 : vector<2x32xf32> to vector<2x32xbf16>
    %c3_96 = arith.constant 3 : index
    %c0_97 = arith.constant 0 : index
    %c0_98 = arith.constant 0 : index
    %231 = vector.load %arg6[%c3_96, %c0_97, %c0_98] : memref<8x32x32xbf16, #tpu.memory_space<vmem>>, vector<1x32x32xbf16>
    %232 = vector.shape_cast %231 : vector<1x32x32xbf16> to vector<32x32xbf16>
    %cst_99 = arith.constant dense<0.000000e+00> : vector<2x32xf32>
    %233 = tpu.matmul %230, %232, %cst_99 {dimension_numbers = #tpu.dot_dimension_numbers<[1], [0], [0], [1], [0, 0, 1, 1], [], []>} : vector<2x32xbf16>, vector<32x32xbf16>, vector<2x32xf32> -> vector<2x32xf32>
    %234 = arith.addf %227, %233 : vector<2x32xf32>
    %235 = vector.extract_strided_slice %19 {offsets = [0, 4, 0], sizes = [2, 1, 32], strides = [1, 1, 1]} : vector<2x8x32xf32> to vector<2x1x32xf32>
    %236 = vector.shape_cast %235 : vector<2x1x32xf32> to vector<2x32xf32>
    %237 = arith.truncf %236 : vector<2x32xf32> to vector<2x32xbf16>
    %c4_100 = arith.constant 4 : index
    %c0_101 = arith.constant 0 : index
    %c0_102 = arith.constant 0 : index
    %238 = vector.load %arg6[%c4_100, %c0_101, %c0_102] : memref<8x32x32xbf16, #tpu.memory_space<vmem>>, vector<1x32x32xbf16>
    %239 = vector.shape_cast %238 : vector<1x32x32xbf16> to vector<32x32xbf16>
    %cst_103 = arith.constant dense<0.000000e+00> : vector<2x32xf32>
    %240 = tpu.matmul %237, %239, %cst_103 {dimension_numbers = #tpu.dot_dimension_numbers<[1], [0], [0], [1], [0, 0, 1, 1], [], []>} : vector<2x32xbf16>, vector<32x32xbf16>, vector<2x32xf32> -> vector<2x32xf32>
    %241 = arith.addf %234, %240 : vector<2x32xf32>
    %242 = vector.extract_strided_slice %19 {offsets = [0, 5, 0], sizes = [2, 1, 32], strides = [1, 1, 1]} : vector<2x8x32xf32> to vector<2x1x32xf32>
    %243 = vector.shape_cast %242 : vector<2x1x32xf32> to vector<2x32xf32>
    %244 = arith.truncf %243 : vector<2x32xf32> to vector<2x32xbf16>
    %c5_104 = arith.constant 5 : index
    %c0_105 = arith.constant 0 : index
    %c0_106 = arith.constant 0 : index
    %245 = vector.load %arg6[%c5_104, %c0_105, %c0_106] : memref<8x32x32xbf16, #tpu.memory_space<vmem>>, vector<1x32x32xbf16>
    %246 = vector.shape_cast %245 : vector<1x32x32xbf16> to vector<32x32xbf16>
    %cst_107 = arith.constant dense<0.000000e+00> : vector<2x32xf32>
    %247 = tpu.matmul %244, %246, %cst_107 {dimension_numbers = #tpu.dot_dimension_numbers<[1], [0], [0], [1], [0, 0, 1, 1], [], []>} : vector<2x32xbf16>, vector<32x32xbf16>, vector<2x32xf32> -> vector<2x32xf32>
    %248 = arith.addf %241, %247 : vector<2x32xf32>
    %249 = vector.extract_strided_slice %19 {offsets = [0, 6, 0], sizes = [2, 1, 32], strides = [1, 1, 1]} : vector<2x8x32xf32> to vector<2x1x32xf32>
    %250 = vector.shape_cast %249 : vector<2x1x32xf32> to vector<2x32xf32>
    %251 = arith.truncf %250 : vector<2x32xf32> to vector<2x32xbf16>
    %c6_108 = arith.constant 6 : index
    %c0_109 = arith.constant 0 : index
    %c0_110 = arith.constant 0 : index
    %252 = vector.load %arg6[%c6_108, %c0_109, %c0_110] : memref<8x32x32xbf16, #tpu.memory_space<vmem>>, vector<1x32x32xbf16>
    %253 = vector.shape_cast %252 : vector<1x32x32xbf16> to vector<32x32xbf16>
    %cst_111 = arith.constant dense<0.000000e+00> : vector<2x32xf32>
    %254 = tpu.matmul %251, %253, %cst_111 {dimension_numbers = #tpu.dot_dimension_numbers<[1], [0], [0], [1], [0, 0, 1, 1], [], []>} : vector<2x32xbf16>, vector<32x32xbf16>, vector<2x32xf32> -> vector<2x32xf32>
    %255 = arith.addf %248, %254 : vector<2x32xf32>
    %256 = vector.extract_strided_slice %19 {offsets = [0, 7, 0], sizes = [2, 1, 32], strides = [1, 1, 1]} : vector<2x8x32xf32> to vector<2x1x32xf32>
    %257 = vector.shape_cast %256 : vector<2x1x32xf32> to vector<2x32xf32>
    %258 = arith.truncf %257 : vector<2x32xf32> to vector<2x32xbf16>
    %c7_112 = arith.constant 7 : index
    %c0_113 = arith.constant 0 : index
    %c0_114 = arith.constant 0 : index
    %259 = vector.load %arg6[%c7_112, %c0_113, %c0_114] : memref<8x32x32xbf16, #tpu.memory_space<vmem>>, vector<1x32x32xbf16>
    %260 = vector.shape_cast %259 : vector<1x32x32xbf16> to vector<32x32xbf16>
    %cst_115 = arith.constant dense<0.000000e+00> : vector<2x32xf32>
    %261 = tpu.matmul %258, %260, %cst_115 {dimension_numbers = #tpu.dot_dimension_numbers<[1], [0], [0], [1], [0, 0, 1, 1], [], []>} : vector<2x32xbf16>, vector<32x32xbf16>, vector<2x32xf32> -> vector<2x32xf32>
    %262 = arith.addf %255, %261 : vector<2x32xf32>
    %263 = vector.broadcast %2 : vector<1x32xf32> to vector<2x32xf32>
    %264 = arith.addf %262, %263 : vector<2x32xf32>
    %cst_116 = arith.constant 0.000000e+00 : f32
    %265 = vector.broadcast %cst_116 : f32 to vector<2x32xf32>
    %266 = arith.maximumf %264, %265 : vector<2x32xf32>
    %c0_117 = arith.constant 0 : index
    %c0_118 = arith.constant 0 : index
    %267 = vector.load %arg7[%c0_117, %c0_118] : memref<64x16xbf16, #tpu.memory_space<vmem>>, vector<32x16xbf16>
    %c32_119 = arith.constant 32 : index
    %c0_120 = arith.constant 0 : index
    %268 = vector.load %arg7[%c32_119, %c0_120] : memref<64x16xbf16, #tpu.memory_space<vmem>>, vector<32x16xbf16>
    %269 = arith.truncf %205 : vector<2x32xf32> to vector<2x32xbf16>
    %cst_121 = arith.constant dense<0.000000e+00> : vector<2x16xf32>
    %270 = tpu.matmul %269, %267, %cst_121 {dimension_numbers = #tpu.dot_dimension_numbers<[1], [0], [0], [1], [0, 0, 1, 1], [], []>} : vector<2x32xbf16>, vector<32x16xbf16>, vector<2x16xf32> -> vector<2x16xf32>
    %271 = arith.truncf %266 : vector<2x32xf32> to vector<2x32xbf16>
    %cst_122 = arith.constant dense<0.000000e+00> : vector<2x16xf32>
    %272 = tpu.matmul %271, %268, %cst_122 {dimension_numbers = #tpu.dot_dimension_numbers<[1], [0], [0], [1], [0, 0, 1, 1], [], []>} : vector<2x32xbf16>, vector<32x16xbf16>, vector<2x16xf32> -> vector<2x16xf32>
    %273 = arith.addf %270, %272 : vector<2x16xf32>
    %274 = vector.broadcast %3 : vector<1x16xf32> to vector<2x16xf32>
    %275 = arith.addf %273, %274 : vector<2x16xf32>
    %cst_123 = arith.constant 0.000000e+00 : f32
    %276 = vector.broadcast %cst_123 : f32 to vector<2x16xf32>
    %277 = arith.maximumf %275, %276 : vector<2x16xf32>
    %278 = vector.broadcast %4 : vector<1x16xf32> to vector<2x16xf32>
    %279 = arith.mulf %277, %278 : vector<2x16xf32>
    %cst_124 = arith.constant dense<0.000000e+00> : vector<2xf32>
    %280 = vector.multi_reduction <add>, %279, %cst_124 [1] : vector<2x16xf32> to vector<2xf32>
    %281 = vector.shape_cast %280 : vector<2xf32> to vector<2x1xf32>
    %282 = vector.broadcast %5 : vector<1x1xf32> to vector<2x1xf32>
    %283 = arith.addf %281, %282 : vector<2x1xf32>
    %c0_125 = arith.constant 0 : index
    %c0_126 = arith.constant 0 : index
    %284 = vector.load %arg9[%c0_125, %c0_126] : memref<2x1xf32, #tpu.memory_space<vmem>>, vector<2x1xf32>
    tpu.vector_store %arg9[%c0_125, %c0_126], %283 {strides = array<i32>} : memref<2x1xf32, #tpu.memory_space<vmem>>, vector<2x1xf32>,
    return
  }
  func.func @transform_0(%arg0: i32) -> (i32, i32) {
    %c0_i32 = arith.constant 0 : i32
    %c0_i32_0 = arith.constant 0 : i32
    return %arg0, %c0_i32 : i32, i32
  }
  func.func @transform_1(%arg0: i32) -> (i32, i32) {
    %c0_i32 = arith.constant 0 : i32
    %c0_i32_0 = arith.constant 0 : i32
    %c0_i32_1 = arith.constant 0 : i32
    return %c0_i32, %c0_i32_0 : i32, i32
  }
  func.func @transform_2(%arg0: i32) -> (i32, i32) {
    %c0_i32 = arith.constant 0 : i32
    %c0_i32_0 = arith.constant 0 : i32
    %c0_i32_1 = arith.constant 0 : i32
    return %c0_i32, %c0_i32_0 : i32, i32
  }
  func.func @transform_3(%arg0: i32) -> (i32, i32) {
    %c0_i32 = arith.constant 0 : i32
    %c0_i32_0 = arith.constant 0 : i32
    %c0_i32_1 = arith.constant 0 : i32
    return %c0_i32, %c0_i32_0 : i32, i32
  }
  func.func @transform_4(%arg0: i32) -> (i32, i32, i32) {
    %c0_i32 = arith.constant 0 : i32
    %c0_i32_0 = arith.constant 0 : i32
    %c0_i32_1 = arith.constant 0 : i32
    %c0_i32_2 = arith.constant 0 : i32
    return %c0_i32, %c0_i32_0, %c0_i32_1 : i32, i32, i32
  }
  func.func @transform_5(%arg0: i32) -> (i32, i32, i32) {
    %c0_i32 = arith.constant 0 : i32
    %c0_i32_0 = arith.constant 0 : i32
    %c0_i32_1 = arith.constant 0 : i32
    %c0_i32_2 = arith.constant 0 : i32
    return %c0_i32, %c0_i32_0, %c0_i32_1 : i32, i32, i32
  }
  func.func @transform_6(%arg0: i32) -> (i32, i32) {
    %c0_i32 = arith.constant 0 : i32
    %c0_i32_0 = arith.constant 0 : i32
    %c0_i32_1 = arith.constant 0 : i32
    return %c0_i32, %c0_i32_0 : i32, i32
  }
  func.func @transform_7(%arg0: i32) -> (i32, i32) {
    %c0_i32 = arith.constant 0 : i32
    %c0_i32_0 = arith.constant 0 : i32
    %c0_i32_1 = arith.constant 0 : i32
    return %c0_i32, %c0_i32_0 : i32, i32
  }
  func.func @transform_8(%arg0: i32) -> (i32, i32) {
    %c0_i32 = arith.constant 0 : i32
    %c0_i32_0 = arith.constant 0 : i32
    return %arg0, %c0_i32 : i32, i32
  }
}

</mosaic_0001>

<bundles_post_ra>
// kernel: tpu_custom_call.1
= control target key start
LH: loop header
LB: loop body
LE: loop exit
PB: predicated region body
PF: predicated region fallthrough
CT: control target
= control target key end

     0   :  { %13 = vsyncpa [#allocation3], 0  ;;  %s3090_s0 = inlined_call_operand.vmem [shape: f32[16,16], index: 0, kind: input, shape index: {}]   ;;  %s3091_s1 = inlined_call_operand.vmem [shape: bf16[16,32], index: 1, kind: input, shape index: {}]   ;;  %s3092_s2 = inlined_call_operand.vmem [shape: bf16[32,32], index: 2, kind: input, shape index: {}]   ;;  %s3093_s3 = inlined_call_operand.vmem [shape: bf16[32,4], index: 3, kind: input, shape index: {}]   ;;  %s3094_s4 = inlined_call_operand.hbm [shape: bf16[16,16,32], index: 4, kind: input, shape index: {}]   ;;  %s3095_s5 = inlined_call_operand.hbm [shape: bf16[8,32,32], index: 5, kind: input, shape index: {}]   ;;  %s3096_s6 = inlined_call_operand.vmem [shape: bf16[64,16], index: 6, kind: input, shape index: {}]   ;;  %s3097_s7 = inlined_call_operand.vmem [shape: f32[1,129], index: 7, kind: input, shape index: {}]   ;;  %s3098_s8 = inlined_call_operand.vmem [shape: f32[2,1], index: 8, kind: output, shape index: {}]  }
   0x1   :  { %14 = vsyncpa [#allocation5], 0  ;;  %s2721_s27 = smov [#allocation2]   ;;  %s2673_s9 = scalar_lea.hbm %s3094_s4, 2048 }
   0x2   :  { %s28_s28 = sshll.u32 %s2721_s27, 4  ;;  %p2674_p0 = scmp.ne.s32.totalorder %s3094_s4, %s2673_s9  ;;  %s29_s28 = int_to_ptr.vmem [resolvable:$true] %s28_s28 }
   0x3   :  { %p2677_p1 = scmp.lt.u32.totalorder %s2673_s9, %s3094_s4 }
   0x5   :  { %p2679_p2 = pnand %p2677_p1, %p2674_p0 }
   0x7   :  { %2682 = shalt.err (!%p2679_p2)
}
   0x8   :  { %s2683_s14 = scalar_lea.vmem %s29_s28, 2048  ;;  %p2688_p4 = scmp.lt.s32.totalorder %s29_s28, %s29_s28 }
   0x9   :  { %p2684_p3 = scmp.ne.s32.totalorder %s29_s28, %s2683_s14  ;;  %p2689_p5 = scmp.lt.s32.totalorder %s2683_s14, %s2683_s14 }
   0xb   :  { %p2690_p6 = por %p2689_p5, %p2688_p4 }
   0xd   :  { %p2691_p7 = pnand %p2690_p6, %p2684_p3 }
   0xf   :  { %2694 = shalt.err (!%p2691_p7)
}
  0x10   :  { %s2722_s15 = smov 64   ;;  %s2723_s16 = smov 4  }
  0x11   :  { %34 = dma.hbm_to_vmem [thread:$0]  %s3094_s4, 2048, %s29_s28, [#allocation3], %s2722_s15, %s2722_s15, %s2723_s16  }
  0x12   :  { %s2724_s19 = smov [#allocation4]   ;;  %s2695_s23 = scalar_lea.hbm %s3095_s5, 2048 }
  0x13   :  { %s40_s20 = sshll.u32 %s2724_s19, 4  ;;  %p2696_p8 = scmp.ne.s32.totalorder %s3095_s5, %s2695_s23  ;;  %s41_s20 = int_to_ptr.vmem [resolvable:$true] %s40_s20 }
  0x14   :  { %p2699_p9 = scmp.lt.u32.totalorder %s2695_s23, %s3095_s5 }
  0x16   :  { %p2701_p10 = pnand %p2699_p9, %p2696_p8 }
  0x18   :  { %2704 = shalt.err (!%p2701_p10)
}
  0x19   :  { %s2705_s29 = scalar_lea.vmem %s41_s20, 2048  ;;  %p2710_p12 = scmp.lt.s32.totalorder %s41_s20, %s41_s20 }
  0x1a   :  { %p2706_p11 = scmp.ne.s32.totalorder %s41_s20, %s2705_s29  ;;  %p2711_p13 = scmp.lt.s32.totalorder %s2705_s29, %s2705_s29 }
  0x1c   :  { %p2712_p0 = por %p2711_p13, %p2710_p12 }
  0x1e   :  { %p2713_p1 = pnand %p2712_p0, %p2706_p11 }
  0x20   :  { %2716 = shalt.err (!%p2713_p1)
}
  0x21   :  { %46 = dma.hbm_to_vmem [thread:$0]  %s3095_s5, 2048, %s41_s20, [#allocation5], %s2722_s15, %s2722_s15, %s2723_s16  }
  0x22   :  { %2717 = dma.done.wait [#allocation3], 2048  }
  0x23   :  { %2718 = vsyncadd [#allocation3], 4294965248 }
  0x24   :  { %2719 = dma.done.wait [#allocation5], 2048  }
  0x25   :  { %2720 = vsyncadd [#allocation5], 4294965248  ;;  %v2725_v0 = vmov 0.0   ;;  %vm2726_vm0 = vmmov 0   ;;  %v2608_v1 = vld [vmem:[%s3091_s1] sm:$0xff]   ;;  %v61_v3 = vld [vmem:[%s3090_s0 + $0x8] sm:$0xff]  ;;  %v261_v58 = vlaneseq }
  0x26   :  { %2364 = vmatprep.subr.bf16.mxu0 %v2725_v0  ;;  %2366 = vmatprep.mubr.msk.bf16.mxu0 %vm2726_vm0, %v2725_v0  ;;  %v60_v2 = vld [vmem:[%s3090_s0] sm:$0xff]  ;;  %vm77_vm1 = vcmask 130048   ;;  %v2610_v6 = vld [vmem:[%s3092_s2 + $0x8] sm:$0xff]   ;;  %vm139_vm2 = vcmask 261120   ;;  %vm271_vm3 = vcmask 1041409   ;;  %v2727_v43 = vmov 1  }
  0x27   :  { %2370 = vmatprep.subr.bf16.mxu1 %v2725_v0  ;;  %2374 = vmatprep.mubr.msk.bf16.mxu1 %vm2726_vm0, %v2725_v0  ;;  %v62_v4 = vpack.c.bf16 %v61_v3, %v60_v2  ;;  %v2609_v5 = vld [vmem:[%s3092_s2] sm:$0xff]   ;;  %v2612_v42 = vld [vmem:[%s3093_s3 + $0x8] sm:$0xff]   ;;  %vm330_vm4 = vcmask 1043456   ;;  %v2728_v57 = vmov 0   ;;  %v262_v59 = vand.u32 127, %v261_v58  ;;  %s2732_s21 = smov 96  }
  0x28   :  { %2365 = vmatpush3.bf16.msra.mxu0 %v2608_v1  ;;  %2371 = vmatpush3.bf16.msra.mxu1 %v2609_v5  ;;  %v2611_v7 = vld [vmem:[%s3093_s3] sm:$0xff]   ;;  %v264_v60 = vshrl.u32 %v261_v58, 7  ;;  %vm300_vm6 = vcmask 64512   ;;  %s2731_s3 = smov 112   ;;  %v2613_v58 = vld [vmem:[#allocation2 + $0x8] sm:$0xff]   ;;  %s2733_s4 = smov 32  }
  0x29   :  { %2378 = vmatprep.subr.bf16.mxu0 %v2725_v0  ;;  %2372 = vmatprep.subr.bf16.mxu1 %v2725_v0  ;;  %v2842_v8 = vld [vmem:[%s3097_s7] ss:$0 sm:$0xff]  ;;  %s2734_s28 = smov 16   ;;  %vm2187_vm14 = vcmask 123904   ;;  %vm2198_vm15 = vcmask 1024  }
  0x2a   :  { %2602 = vset.pattern.permute.xlu1 %v2727_v43  ;;  %2600 = vset.pattern.permute.xlu0 %v2727_v43  ;;  %v265_v61 = vsub.s32 %v262_v59, %v264_v60  ;;  %v2614_v59 = vld [vmem:[#allocation2] sm:$0xff]  }
  0x2b   :  { %2367 = vmatmul.mubr.msk.bf16.vlgmr.msra.gmra.mrb[0].mxu0 %vm77_vm1, %v62_v4 }
  0x2c   :  { %2382 = vmatprep.mubr.msk.bf16.mxu0 %vm2726_vm0, %v2725_v0  ;;  %2373 = vmatpush3.bf16.msra.mxu1 %v2610_v6 }
  0x2d   :  { %2386 = vmatprep.subr.bf16.mxu1 %v2725_v0  ;;  %2379 = vmatpush3.bf16.msra.mxu0 %v2611_v7 }
  0x2e   :  { %2380 = vmatprep.subr.bf16.mxu0 %v2725_v0 }
  0x31   :  { %2381 = vmatpush3.bf16.msra.mxu0 %v2612_v42 }
  0x32   :  { %2392 = vmatprep.subr.bf16.mxu0 %v2725_v0 }
  0xfe   :  { %v115_v9 = vpop.f32.mrb[0].mxu0 }
  0xff   :  { %v116_v10 = vadd.f32 %v2842_v8, %v115_v9  ;;  %v2368_v11 = vpop.f32.mrb[1].mxu0 }
 0x100   :  { %v118_v12 = vpop.f32.mrb[2].mxu0 }
 0x101   :  { %v1532_v13 = vpack.c.bf16 %v116_v10, %v116_v10  ;;  %v119_v14 = vadd.f32 %v2842_v8, %v118_v12  ;;  %v2369_v15 = vpop.f32.mrb[3].mxu0 }
 0x102   :  { %v2730_v15 = vmov 3  }
 0x103   :  { %v1545_v16 = vunpack.c.l.b16 %v1532_v13  ;;  %v122_v17 = vpack.c.bf16 %v119_v14, %v116_v10  ;;  %v1533_v18 = vpack.c.bf16 %v119_v14, %v119_v14  ;;  %v2729_v14 = vmov 2  }
 0x105   :  { %v1546_v19 = vunpack.c.l.b16 %v1533_v18  ;;  %2375 = vmatmul.mubr.msk.bf16.vlgmr.msra.gmra.mrb[0].mxu1 %vm139_vm2, %v122_v17  ;;  %v1547_v20 = vrot.slane %v1545_v16, 1  ;;  %v1733_v21 = vrot.slane %v1545_v16, 3  ;;  %v1668_v22 = vrot.slane %v1545_v16, 2 }
 0x106   :  { %2388 = vmatprep.mubr.msk.bf16.mxu1 %vm2726_vm0, %v2725_v0  ;;  %v1863_v23 = vrot.slane %v1545_v16, 5  ;;  %v1798_v24 = vrot.slane %v1545_v16, 4  ;;  %v1993_v25 = vrot.slane %v1545_v16, 7  ;;  %v1928_v33 = vrot.slane %v1545_v16, 6 }
 0x107   :  { %v1605_v26 = vrot.slane %v1546_v19, 7  ;;  %v2850_v27 = vsel %vm271_vm3, %v1546_v19, %v1547_v20  ;;  %v1734_v28 = vrot.slane %v1546_v19, 2  ;;  %v1669_v29 = vrot.slane %v1546_v19, 1 }
 0x108   :  { %v1864_v30 = vrot.slane %v1546_v19, 4  ;;  %v1799_v31 = vrot.slane %v1546_v19, 3  ;;  %v1994_v32 = vrot.slane %v1546_v19, 6  ;;  %v1929_v37 = vrot.slane %v1546_v19, 5 }
 0x109   :  { %v2853_v34 = vsel %vm271_vm3, %v1605_v26, %v1545_v16  ;;  %v2856_v35 = vsel %vm271_vm3, %v1734_v28, %v1733_v21  ;;  %v2859_v36 = vsel %vm271_vm3, %v1669_v29, %v1668_v22 }
 0x10a   :  { %v2862_v38 = vsel %vm271_vm3, %v1864_v30, %v1863_v23  ;;  %v2865_v39 = vsel %vm271_vm3, %v1799_v31, %v1798_v24  ;;  %v2868_v40 = vsel %vm271_vm3, %v1994_v32, %v1993_v25  ;;  %v2871_v41 = vsel %vm271_vm3, %v1929_v37, %v1928_v33 }
 0x1d8   :  { %v177_v44 = vpop.f32.mrb[0].mxu1 }
 0x1d9   :  { %v2877_v45 = vpack.c.bf16 %v177_v44, %v177_v44  ;;  %v2376_v46 = vpop.f32.mrb[1].mxu1 }
 0x1da   :  { %v180_v47 = vpop.f32.mrb[2].mxu1 }
 0x1db   :  { %v184_v48 = vpack.c.bf16 %v180_v47, %v177_v44  ;;  %v2879_v49 = vpack.c.bf16 %v180_v47, %v180_v47  ;;  %v2377_v50 = vpop.f32.mrb[3].mxu1  ;;  %v332_v51 = vsel %vm330_vm4, %v2877_v45, 0 }
 0x1dc   :  { %2387 = vmatpush3.bf16.msra.mxu1 %v332_v51 }
 0x1dd   :  { %2383 = vmatmul.mubr.msk.bf16.vlgmr.msra.gmra.mrb[4].mxu0 %vm139_vm2, %v184_v48  ;;  %v378_v52 = vsel %vm330_vm4, %v2879_v49, 0  ;;  %2398 = vmatprep.subr.bf16.mxu1 %v2725_v0 }
 0x1de   :  { %2393 = vmatpush3.bf16.msra.mxu0 %v378_v52  ;;  %2394 = vmatprep.mubr.msk.bf16.mxu0 %vm2726_vm0, %v2725_v0 }
 0x1df   :  { %2404 = vmatprep.subr.bf16.mxu0 %v2725_v0 }
 0x2b0   :  { %v238_v53 = vpop.f32.mrb[4].mxu0 }
 0x2b1   :  { %256 = vperm.xlu1 %2602, %v238_v53   ;;  %v2384_v54 = vpop.f32.mrb[5].mxu0 }
 0x2b2   :  { %v241_v55 = vpop.f32.mrb[6].mxu0 }
 0x2b3   :  { %259 = vperm.xlu0 %2600, %v241_v55   ;;  %v2385_v56 = vpop.f32.mrb[7].mxu0 }
 0x2b5   :  { %2603 = vset.pattern.permute.xlu1 %v2728_v57 }
 0x2b6   :  { %247 = vperm.xlu1 %2603, %v238_v53  }
 0x2b7   :  { %2601 = vset.pattern.permute.xlu0 %v2728_v57 }
 0x2b8   :  { %252 = vperm.xlu0 %2601, %v241_v55  }
 0x2ba   :  { %2605 = vset.pattern.permute.xlu1 %v2729_v14 }
 0x2bc   :  { %2604 = vset.pattern.permute.xlu0 %v2730_v15 }
 0x330   :  { %v257_v62 = vpop.permute.xlu1 %256 }
 0x331   :  { %v266_v1 = vrot.slane %v257_v62, %v265_v61 }
 0x332   :  { %v260_v63 = vpop.permute.xlu0 %259 }
 0x333   :  { %v270_v3 = vrot.slane %v260_v63, %v265_v61 }
 0x335   :  { %v248_v2 = vpop.permute.xlu1 %247 }
 0x336   :  { %v292_v4 = vadd.f32 %v266_v1, %v248_v2 }
 0x337   :  { %v253_v5 = vpop.permute.xlu0 %252 }
 0x338   :  { %v296_v6 = vmul.f32 0.2, %v292_v4  ;;  %v293_v7 = vadd.f32 %v270_v3, %v253_v5  ;;  %vm294_vm5 = vcmp.gt.f32.partialorder %v292_v4, 0.0 }
 0x33a   :  { %v297_v9 = vmul.f32 0.2, %v293_v7  ;;  %v298_v10 = vsel %vm294_vm5, %v292_v4, %v296_v6  ;;  %vm295_vm7 = vcmp.gt.f32.partialorder %v293_v7, 0.0 }
 0x33b   :  { %v301_v11 = vsel %vm300_vm6, %v298_v10, -inf }
 0x33c   :  { %302 = vmax.xlane.f32.xlu0 %v301_v11  ;;  %v299_v12 = vsel %vm295_vm7, %v293_v7, %v297_v9 }
 0x33d   :  { %v304_v13 = vsel %vm300_vm6, %v299_v12, -inf }
 0x33e   :  { %305 = vmax.xlane.f32.xlu1 %v304_v13 }
 0x3c9   :  { %v303_v16 = vpop.xlane.xlu0 %302 }
 0x3ca   :  { %v307_v17 = vsub.f32 %v298_v10, %v303_v16 }
 0x3cb   :  { %v306_v18 = vpop.xlane.xlu1 %305 }
 0x3cc   :  { %v309_v19 = vmul.f32 1.442695, %v307_v17  ;;  %v308_v20 = vsub.f32 %v299_v12, %v306_v18 }
 0x3ce   :  { %2649 = vpow2.f32 %v309_v19  ;;  %v311_v21 = vmul.f32 1.442695, %v308_v20 }
 0x3d0   :  { %2651 = vpow2.f32 %v311_v21 }
 0x3d8   :  { %v2650_v22 = vpop.eup %2649 }
 0x3d9   :  { %v313_v23 = vsel %vm300_vm6, %v2650_v22, 0.0 }
 0x3da   :  { %v2652_v24 = vpop.eup %2651  ;;  %314 = vadd.xlane.f32.xlu1 %v313_v23 }
 0x3db   :  { %v316_v25 = vsel %vm300_vm6, %v2652_v24, 0.0 }
 0x3dc   :  { %317 = vadd.xlane.f32.xlu0 %v316_v25 }
 0x3eb   :  { %894 = vperm.xlu1 %2605, %v241_v55  }
 0x3ef   :  { %2606 = vset.pattern.permute.xlu1 %v2730_v15 }
 0x3f0   :  { %898 = vperm.xlu1 %2606, %v238_v53  }
 0x3f2   :  { %901 = vperm.xlu0 %2604, %v241_v55  }
 0x3f4   :  { %2607 = vset.pattern.permute.xlu1 %v2729_v14 }
 0x3f5   :  { %890 = vperm.xlu1 %2607, %v238_v53  }
 0x467   :  { %v315_v26 = vpop.xlane.xlu1 %314 }
 0x468   :  { %2653 = vrcp.f32 %v315_v26 }
 0x469   :  { %v318_v28 = vpop.xlane.xlu0 %317 }
 0x46a   :  { %2655 = vrcp.f32 %v318_v28 }
 0x46b   :  { %v895_v29 = vpop.permute.xlu1 %894 }
 0x46f   :  { %v899_v30 = vpop.permute.xlu1 %898 }
 0x470   :  { %v906_v42 = vrot.slane %v899_v30, %v265_v61 }
 0x471   :  { %v902_v31 = vpop.permute.xlu0 %901 }
 0x472   :  { %v2654_v32 = vpop.eup %2653  ;;  %v910_v33 = vrot.slane %v902_v31, %v265_v61 }
 0x473   :  { %v321_v37 = vmul.f32 %v2654_v32, %v2650_v22 }
 0x474   :  { %v2656_v43 = vpop.eup %2655  ;;  %v926_v44 = vadd.f32 %v910_v33, %v895_v29  ;;  %v891_v46 = vpop.permute.xlu1 %890 }
 0x475   :  { %v322_v47 = vmul.f32 %v2656_v43, %v2652_v24  ;;  %v925_v48 = vadd.f32 %v906_v42, %v891_v46  ;;  %v323_v50 = vpack.c.bf16 %v321_v37, %v321_v37 }
 0x476   :  { %vm928_vm8 = vcmp.gt.f32.partialorder %v926_v44, 0.0  ;;  %v930_v51 = vmul.f32 0.2, %v926_v44 }
 0x477   :  { %v929_v52 = vmul.f32 0.2, %v925_v48  ;;  %2389 = vmatmul.mubr.msk.bf16.vlgmr.msra.gmra.mrb[4].mxu1 %vm300_vm6, %v323_v50  ;;  %v324_v53 = vpack.c.bf16 %v322_v47, %v322_v47  ;;  %vm927_vm9 = vcmp.gt.f32.partialorder %v925_v48, 0.0 }
 0x478   :  { %v932_v54 = vsel %vm928_vm8, %v926_v44, %v930_v51  ;;  %2400 = vmatprep.mubr.msk.bf16.mxu1 %vm2726_vm0, %v2725_v0  ;;  %2399 = vmatpush3.bf16.msra.mxu1 %v2613_v58  ;;  %v2615_v44 = vld [vmem:[#allocation2 + $0x10] sm:$0xff]  }
 0x479   :  { %2395 = vmatmul.mubr.msk.bf16.vlgmr.msra.gmra.mrb[8].mxu0 %vm300_vm6, %v324_v53  ;;  %v936_v55 = vsel %vm300_vm6, %v932_v54, -inf  ;;  %v931_v56 = vsel %vm927_vm9, %v925_v48, %v929_v52  ;;  %2410 = vmatprep.subr.bf16.mxu1 %v2725_v0 }
 0x47a   :  { %937 = vmax.xlane.f32.xlu1 %v936_v55  ;;  %v933_v57 = vsel %vm300_vm6, %v931_v56, -inf  ;;  %2406 = vmatprep.mubr.msk.bf16.mxu0 %vm2726_vm0, %v2725_v0 }
 0x47b   :  { %934 = vmax.xlane.f32.xlu0 %v933_v57  ;;  %2405 = vmatpush3.bf16.msra.mxu0 %v2614_v59 }
 0x47c   :  { %2416 = vmatprep.subr.bf16.mxu0 %v2725_v0 }
 0x491   :  { %958 = vrot.lane.b32.xlu0 %v2877_v45, %s2731_s3 }
 0x495   :  { %2183 = vrot.lane.b32.xlu0 %v2842_v8, %s2734_s28 }
 0x507   :  { %v938_v60 = vpop.xlane.xlu1 %937 }
 0x508   :  { %v940_v61 = vsub.f32 %v932_v54, %v938_v60  ;;  %v935_v62 = vpop.xlane.xlu0 %934  ;;  %v2616_v54 = vld [vmem:[#allocation2 + $0x18] sm:$0xff]  }
 0x509   :  { %v939_v63 = vsub.f32 %v931_v56, %v935_v62 }
 0x50a   :  { %v943_v1 = vmul.f32 1.442695, %v940_v61 }
 0x50b   :  { %v941_v2 = vmul.f32 1.442695, %v939_v63 }
 0x50d   :  { %2657 = vpow2.f32 %v941_v2 }
 0x50e   :  { %2659 = vpow2.f32 %v943_v1  ;;  %v2617_v1 = vld [vmem:[#allocation2 + $0x20] sm:$0xff]  }
 0x517   :  { %v2905_v3 = vpop.eup %2657 }
 0x518   :  { %v945_v45 = vsel %vm300_vm6, %v2905_v3, 0.0  ;;  %v2909_v4 = vpop.eup %2659 }
 0x519   :  { %946 = vadd.xlane.f32.xlu1 %v945_v45  ;;  %v948_v5 = vsel %vm300_vm6, %v2909_v4, 0.0  ;;  %v2618_v45 = vld [vmem:[#allocation2 + $0x28] sm:$0xff]  }
 0x51d   :  { %949 = vadd.xlane.f32.xlu1 %v948_v5 }
 0x52e   :  { %1007 = vrot.lane.b32.xlu1 %v2879_v49, %s2731_s3 }
 0x532   :  { %1527 = vrot.lane.b32.xlu1 %v2842_v8, %s2732_s21 }
 0x536   :  { %2053 = vrot.lane.b32.xlu1 %v2842_v8, %s2722_s15 }
 0x53a   :  { %2178 = vrot.lane.b32.xlu1 %v2842_v8, %s2733_s4 }
 0x54a   :  { %v368_v6 = vpop.f32.mrb[4].mxu1 }
 0x54b   :  { %v422_v7 = vmin.f32 %v368_v6, 0.0  ;;  %v2390_v9 = vpop.f32.mrb[5].mxu1  ;;  %vm420_vm10 = vcmp.gt.f32.partialorder %v368_v6, 0.0 }
 0x54c   :  { %v371_v10 = vpop.f32.mrb[6].mxu1  ;;  %v414_v11 = vpop.f32.mrb[8].mxu0  ;;  %v2620_v9 = vld [vmem:[#allocation2 + $0x38] sm:$0xff]  }
 0x54d   :  { %v424_v12 = vmul.f32 1.442695, %v422_v7  ;;  %v423_v13 = vmin.f32 %v414_v11, 0.0  ;;  %v2391_v14 = vpop.f32.mrb[7].mxu1  ;;  %v2396_v15 = vpop.f32.mrb[9].mxu0  ;;  %vm421_vm11 = vcmp.gt.f32.partialorder %v414_v11, 0.0 }
 0x54e   :  { %v417_v16 = vpop.f32.mrb[10].mxu0 }
 0x54f   :  { %2661 = vpow2.f32 %v424_v12  ;;  %v426_v17 = vmul.f32 1.442695, %v423_v13  ;;  %v2397_v18 = vpop.f32.mrb[11].mxu0 }
 0x551   :  { %2663 = vpow2.f32 %v426_v17 }
 0x559   :  { %v2662_v19 = vpop.eup %2661 }
 0x55a   :  { %v2217_v20 = vadd.f32 -1.0, %v2662_v19 }
 0x55b   :  { %v2664_v21 = vpop.eup %2663 }
 0x55c   :  { %v430_v22 = vsel %vm420_vm10, %v368_v6, %v2217_v20  ;;  %v2218_v49 = vadd.f32 -1.0, %v2664_v21  ;;  %v2619_v6 = vld [vmem:[#allocation2 + $0x30] sm:$0xff]  }
 0x55d   :  { %v432_v23 = vpack.c.bf16 %v430_v22, %v430_v22 }
 0x55e   :  { %v431_v24 = vsel %vm421_vm11, %v414_v11, %v2218_v49  ;;  %v959_v11 = vpop.permute.xlu0 %958 }
 0x55f   :  { %v441_v25 = vunpack.c.l.b16 %v432_v23  ;;  %v433_v26 = vpack.c.bf16 %v431_v24, %v431_v24  ;;  %v964_v13 = vsel %vm330_vm4, %v959_v11, 0  ;;  %v2621_v24 = vld [vmem:[#allocation2 + $0x40] sm:$0xff]  }
 0x561   :  { %v442_v28 = vunpack.c.l.b16 %v433_v26  ;;  %v443_v29 = vrot.slane %v441_v25, 1  ;;  %v550_v30 = vrot.slane %v441_v25, 2  ;;  %v607_v31 = vrot.slane %v441_v25, 3 }
 0x562   :  { %v664_v32 = vrot.slane %v441_v25, 4  ;;  %v721_v33 = vrot.slane %v441_v25, 5  ;;  %v778_v37 = vrot.slane %v441_v25, 6  ;;  %v835_v60 = vrot.slane %v441_v25, 7 }
 0x563   :  { %v444_v42 = vsel %vm271_vm3, %v442_v28, %v443_v29  ;;  %v495_v43 = vrot.slane %v442_v28, 7  ;;  %v551_v46 = vrot.slane %v442_v28, 1  ;;  %v608_v47 = vrot.slane %v442_v28, 2 }
 0x564   :  { %v445_v48 = vpack.c.b16 %v444_v42, %v444_v42  ;;  %v665_v50 = vrot.slane %v442_v28, 3  ;;  %v722_v51 = vrot.slane %v442_v28, 4  ;;  %v779_v52 = vrot.slane %v442_v28, 5 }
 0x565   :  { %v496_v53 = vsel %vm271_vm3, %v495_v43, %v441_v25  ;;  %v552_v55 = vsel %vm271_vm3, %v551_v46, %v550_v30  ;;  %v609_v56 = vsel %vm271_vm3, %v608_v47, %v607_v31  ;;  %v836_v57 = vrot.slane %v442_v28, 6  ;;  %v2622_v25 = vld [vmem:[#allocation2 + $0x48] sm:$0xff]  }
 0x566   :  { %2401 = vmatmul.mubr.msk.bf16.vlgmr.msra.gmra.mrb[8].mxu1 %vm77_vm1, %v445_v48  ;;  %v497_v58 = vpack.c.b16 %v496_v53, %v496_v53  ;;  %v666_v59 = vsel %vm271_vm3, %v665_v50, %v664_v32  ;;  %v723_v61 = vsel %vm271_vm3, %v722_v51, %v721_v33  ;;  %v780_v62 = vsel %vm271_vm3, %v779_v52, %v778_v37 }
 0x567   :  { %2411 = vmatpush3.bf16.msra.mxu1 %v2615_v44  ;;  %2412 = vmatprep.mubr.msk.bf16.mxu1 %vm2726_vm0, %v2725_v0  ;;  %v837_v63 = vsel %vm271_vm3, %v836_v57, %v835_v60  ;;  %v553_v2 = vpack.c.b16 %v552_v55, %v552_v55  ;;  %v610_v5 = vpack.c.b16 %v609_v56, %v609_v56 }
 0x568   :  { %2407 = vmatmul.mubr.msk.bf16.vlgmr.msra.gmra.mrb[12].mxu0 %vm77_vm1, %v497_v58  ;;  %2422 = vmatprep.subr.bf16.mxu1 %v2725_v0  ;;  %v667_v7 = vpack.c.b16 %v666_v59, %v666_v59  ;;  %v724_v10 = vpack.c.b16 %v723_v61, %v723_v61  ;;  %v781_v12 = vpack.c.b16 %v780_v62, %v780_v62 }
 0x569   :  { %2417 = vmatpush3.bf16.msra.mxu0 %v2616_v54  ;;  %2418 = vmatprep.mubr.msk.bf16.mxu0 %vm2726_vm0, %v2725_v0  ;;  %v838_v14 = vpack.c.b16 %v837_v63, %v837_v63 }
 0x56a   :  { %2428 = vmatprep.subr.bf16.mxu0 %v2725_v0 }
 0x56e   :  { %2413 = vmatmul.mubr.msk.bf16.vlgmr.msra.gmra.mrb[12].mxu1 %vm77_vm1, %v553_v2 }
 0x56f   :  { %2423 = vmatpush3.bf16.msra.mxu1 %v2617_v1  ;;  %2424 = vmatprep.mubr.msk.bf16.mxu1 %vm2726_vm0, %v2725_v0 }
 0x570   :  { %2419 = vmatmul.mubr.msk.bf16.vlgmr.msra.gmra.mrb[16].mxu0 %vm77_vm1, %v610_v5  ;;  %2434 = vmatprep.subr.bf16.mxu1 %v2725_v0 }
 0x571   :  { %2429 = vmatpush3.bf16.msra.mxu0 %v2618_v45  ;;  %2430 = vmatprep.mubr.msk.bf16.mxu0 %vm2726_vm0, %v2725_v0 }
 0x572   :  { %2440 = vmatprep.subr.bf16.mxu0 %v2725_v0 }
 0x576   :  { %2425 = vmatmul.mubr.msk.bf16.vlgmr.msra.gmra.mrb[16].mxu1 %vm77_vm1, %v667_v7 }
 0x577   :  { %2435 = vmatpush3.bf16.msra.mxu1 %v2619_v6  ;;  %2436 = vmatprep.mubr.msk.bf16.mxu1 %vm2726_vm0, %v2725_v0 }
 0x578   :  { %2431 = vmatmul.mubr.msk.bf16.vlgmr.msra.gmra.mrb[20].mxu0 %vm77_vm1, %v724_v10  ;;  %2446 = vmatprep.subr.bf16.mxu1 %v2725_v0 }
 0x579   :  { %2441 = vmatpush3.bf16.msra.mxu0 %v2620_v9  ;;  %2442 = vmatprep.mubr.msk.bf16.mxu0 %vm2726_vm0, %v2725_v0 }
 0x57a   :  { %2452 = vmatprep.subr.bf16.mxu0 %v2725_v0 }
 0x57e   :  { %2437 = vmatmul.mubr.msk.bf16.vlgmr.msra.gmra.mrb[20].mxu1 %vm77_vm1, %v781_v12 }
 0x57f   :  { %2447 = vmatpush3.bf16.msra.mxu1 %v964_v13  ;;  %2448 = vmatprep.mubr.msk.bf16.mxu1 %vm2726_vm0, %v2725_v0 }
 0x580   :  { %2443 = vmatmul.mubr.msk.bf16.vlgmr.msra.gmra.mrb[24].mxu0 %vm77_vm1, %v838_v14  ;;  %2458 = vmatprep.subr.bf16.mxu1 %v2725_v0 }
 0x581   :  { %2454 = vmatprep.mubr.msk.bf16.mxu0 %vm2726_vm0, %v2725_v0 }
 0x5a6   :  { %v947_v15 = vpop.xlane.xlu1 %946 }
 0x5a7   :  { %2665 = vrcp.f32 %v947_v15 }
 0x5aa   :  { %v950_v16 = vpop.xlane.xlu1 %949 }
 0x5ab   :  { %2667 = vrcp.f32 %v950_v16 }
 0x5ae   :  { %v1008_v17 = vpop.permute.xlu1 %1007 }
 0x5af   :  { %v1013_v18 = vsel %vm330_vm4, %v1008_v17, 0 }
 0x5b0   :  { %2453 = vmatpush3.bf16.msra.mxu0 %v1013_v18 }
 0x5b1   :  { %v2666_v19 = vpop.eup %2665  ;;  %2464 = vmatprep.subr.bf16.mxu0 %v2725_v0 }
 0x5b2   :  { %v953_v20 = vmul.f32 %v2666_v19, %v2905_v3 }
 0x5b4   :  { %v955_v21 = vpack.c.bf16 %v953_v20, %v953_v20 }
 0x5b5   :  { %v2668_v22 = vpop.eup %2667 }
 0x5b6   :  { %v954_v49 = vmul.f32 %v2668_v22, %v2909_v4  ;;  %2449 = vmatmul.mubr.msk.bf16.vlgmr.msra.gmra.mrb[24].mxu1 %vm300_vm6, %v955_v21 }
 0x5b7   :  { %2460 = vmatprep.mubr.msk.bf16.mxu1 %vm2726_vm0, %v2725_v0  ;;  %2459 = vmatpush3.bf16.msra.mxu1 %v2621_v24 }
 0x5b8   :  { %v956_v23 = vpack.c.bf16 %v954_v49, %v954_v49  ;;  %2470 = vmatprep.subr.bf16.mxu1 %v2725_v0 }
 0x5ba   :  { %2455 = vmatmul.mubr.msk.bf16.vlgmr.msra.gmra.mrb[28].mxu0 %vm300_vm6, %v956_v23 }
 0x5bb   :  { %2466 = vmatprep.mubr.msk.bf16.mxu0 %vm2726_vm0, %v2725_v0  ;;  %2465 = vmatpush3.bf16.msra.mxu0 %v2622_v25 }
 0x5bc   :  { %2476 = vmatprep.subr.bf16.mxu0 %v2725_v0 }
 0x639   :  { %v489_v3 = vpop.f32.mrb[8].mxu1 }
 0x63a   :  { %v2402_v4 = vpop.f32.mrb[9].mxu1 }
 0x63b   :  { %v492_v26 = vpop.f32.mrb[10].mxu1  ;;  %v541_v28 = vpop.f32.mrb[12].mxu0 }
 0x63c   :  { %v542_v29 = vadd.f32 %v541_v28, %v489_v3  ;;  %v2403_v30 = vpop.f32.mrb[11].mxu1  ;;  %v2408_v31 = vpop.f32.mrb[13].mxu0 }
 0x63d   :  { %v544_v32 = vpop.f32.mrb[14].mxu0 }
 0x63e   :  { %v2409_v33 = vpop.f32.mrb[15].mxu0 }
 0x641   :  { %v597_v37 = vpop.f32.mrb[12].mxu1 }
 0x642   :  { %v603_v42 = vadd.f32 %v597_v37, %v542_v29  ;;  %v2414_v43 = vpop.f32.mrb[13].mxu1 }
 0x643   :  { %v600_v44 = vpop.f32.mrb[14].mxu1  ;;  %v654_v46 = vpop.f32.mrb[16].mxu0 }
 0x644   :  { %v660_v47 = vadd.f32 %v654_v46, %v603_v42  ;;  %v2415_v48 = vpop.f32.mrb[15].mxu1  ;;  %v2420_v50 = vpop.f32.mrb[17].mxu0 }
 0x645   :  { %v657_v51 = vpop.f32.mrb[18].mxu0  ;;  %v2624_v48 = vld [vmem:[#allocation2 + $0x58] sm:$0xff]  }
 0x646   :  { %v2421_v52 = vpop.f32.mrb[19].mxu0 }
 0x649   :  { %v711_v53 = vpop.f32.mrb[16].mxu1 }
 0x64a   :  { %v717_v54 = vadd.f32 %v711_v53, %v660_v47  ;;  %v2426_v55 = vpop.f32.mrb[17].mxu1 }
 0x64b   :  { %v714_v56 = vpop.f32.mrb[18].mxu1  ;;  %v768_v57 = vpop.f32.mrb[20].mxu0 }
 0x64c   :  { %v774_v58 = vadd.f32 %v768_v57, %v717_v54  ;;  %v2427_v59 = vpop.f32.mrb[19].mxu1  ;;  %v2432_v60 = vpop.f32.mrb[21].mxu0  ;;  %v2623_v57 = vld [vmem:[#allocation2 + $0x50] sm:$0xff]  }
 0x64d   :  { %v771_v61 = vpop.f32.mrb[22].mxu0 }
 0x64e   :  { %v2433_v62 = vpop.f32.mrb[23].mxu0 }
 0x651   :  { %v825_v63 = vpop.f32.mrb[20].mxu1 }
 0x652   :  { %v831_v1 = vadd.f32 %v825_v63, %v774_v58  ;;  %v2438_v2 = vpop.f32.mrb[21].mxu1 }
 0x653   :  { %v828_v45 = vpop.f32.mrb[22].mxu1  ;;  %v882_v5 = vpop.f32.mrb[24].mxu0 }
 0x654   :  { %v2966_v6 = vadd.f32 %v882_v5, %v831_v1  ;;  %v2439_v7 = vpop.f32.mrb[23].mxu1  ;;  %v2444_v9 = vpop.f32.mrb[25].mxu0  ;;  %v2626_v5 = vld [vmem:[#allocation2 + $0x68] sm:$0xff]  }
 0x655   :  { %v885_v10 = vpop.f32.mrb[26].mxu0  ;;  %v2625_v9 = vld [vmem:[#allocation2 + $0x60] sm:$0xff]  }
 0x656   :  { %v2445_v11 = vpop.f32.mrb[27].mxu0 }
 0x657   :  { %v2628_v11 = vld [vmem:[#allocation2 + $0x78] sm:$0xff]  }
 0x689   :  { %v1000_v12 = vpop.f32.mrb[24].mxu1 }
 0x68a   :  { %v1057_v13 = vmin.f32 %v1000_v12, 0.0  ;;  %v2450_v14 = vpop.f32.mrb[25].mxu1  ;;  %vm1055_vm12 = vcmp.gt.f32.partialorder %v1000_v12, 0.0 }
 0x68b   :  { %v1003_v15 = vpop.f32.mrb[26].mxu1 }
 0x68c   :  { %v1059_v16 = vmul.f32 1.442695, %v1057_v13  ;;  %v2451_v17 = vpop.f32.mrb[27].mxu1  ;;  %v2627_v13 = vld [vmem:[#allocation2 + $0x70] sm:$0xff]   ;;  %v2629_v15 = vld [vmem:[#allocation4] sm:$0xff]  }
 0x68d   :  { %v1049_v18 = vpop.f32.mrb[28].mxu0  ;;  %v2630_v17 = vld [vmem:[#allocation4 + $0x10] sm:$0xff]  }
 0x68e   :  { %2669 = vpow2.f32 %v1059_v16  ;;  %v1058_v19 = vmin.f32 %v1049_v18, 0.0  ;;  %v2456_v20 = vpop.f32.mrb[29].mxu0  ;;  %vm1056_vm13 = vcmp.gt.f32.partialorder %v1049_v18, 0.0 }
 0x68f   :  { %v1052_v21 = vpop.f32.mrb[30].mxu0  ;;  %v2632_v20 = vld [vmem:[#allocation4 + $0x18] sm:$0xff]  }
 0x690   :  { %v1061_v22 = vmul.f32 1.442695, %v1058_v19  ;;  %v2457_v49 = vpop.f32.mrb[31].mxu0  ;;  %v2631_v19 = vld [vmem:[#allocation4 + $0x8] sm:$0xff]   ;;  %v2633_v21 = vld [vmem:[#allocation4 + $0x30] sm:$0xff]  }
 0x691   :  { %v2634_v49 = vld [vmem:[#allocation4 + $0x20] sm:$0xff]  }
 0x692   :  { %2671 = vpow2.f32 %v1061_v22  ;;  %v1607_v22 = vpack.c.b16 %v2853_v34, %v2853_v34  ;;  %v2636_v34 = vld [vmem:[#allocation4 + $0x28] sm:$0xff]  }
 0x698   :  { %v2670_v23 = vpop.eup %2669 }
 0x699   :  { %v2237_v24 = vadd.f32 -1.0, %v2670_v23  ;;  %v1549_v23 = vpack.c.b16 %v2850_v27, %v2850_v27  ;;  %v1736_v27 = vpack.c.b16 %v2856_v35, %v2856_v35  ;;  %v2640_v35 = vld [vmem:[#allocation4 + $0x48] sm:$0xff]  }
 0x69b   :  { %v1065_v25 = vsel %vm1055_vm12, %v1000_v12, %v2237_v24  ;;  %v2635_v24 = vld [vmem:[#allocation4 + $0x38] sm:$0xff]  }
 0x69c   :  { %v2672_v3 = vpop.eup %2671  ;;  %v1067_v4 = vpack.c.bf16 %v1065_v25, %v1065_v25  ;;  %v2637_v25 = vld [vmem:[#allocation4 + $0x50] sm:$0xff]  }
 0x69d   :  { %v2238_v26 = vadd.f32 -1.0, %v2672_v3  ;;  %v2638_v3 = vld [vmem:[#allocation4 + $0x40] sm:$0xff]  }
 0x69e   :  { %v1074_v28 = vunpack.c.l.b16 %v1067_v4  ;;  %v1671_v4 = vpack.c.b16 %v2859_v36, %v2859_v36  ;;  %v1866_v36 = vpack.c.b16 %v2862_v38, %v2862_v38  ;;  %v2644_v38 = vld [vmem:[#allocation4 + $0x68] sm:$0xff]  }
 0x69f   :  { %v1066_v29 = vsel %vm1056_vm13, %v1049_v18, %v2238_v26  ;;  %v2639_v26 = vld [vmem:[#allocation4 + $0x58] sm:$0xff]  }
 0x6a0   :  { %v1068_v30 = vpack.c.bf16 %v1066_v29, %v1066_v29  ;;  %v1132_v32 = vrot.slane %v1074_v28, 1  ;;  %v1245_v33 = vrot.slane %v1074_v28, 3  ;;  %v1188_v37 = vrot.slane %v1074_v28, 2  ;;  %v2642_v29 = vld [vmem:[#allocation4 + $0x60] sm:$0xff]  }
 0x6a1   :  { %v1359_v42 = vrot.slane %v1074_v28, 5  ;;  %v1302_v43 = vrot.slane %v1074_v28, 4  ;;  %v1473_v44 = vrot.slane %v1074_v28, 7  ;;  %v1416_v63 = vrot.slane %v1074_v28, 6 }
 0x6a2   :  { %v1075_v31 = vunpack.c.l.b16 %v1068_v30  ;;  %v1801_v30 = vpack.c.b16 %v2865_v39, %v2865_v39  ;;  %v1996_v39 = vpack.c.b16 %v2868_v40, %v2868_v40  ;;  %v2645_v40 = vld [vmem:[%s3096_s6] sm:$0xff]  }
 0x6a4   :  { %v1133_v46 = vsel %vm271_vm3, %v1075_v31, %v1132_v32  ;;  %v1076_v47 = vrot.slane %v1075_v31, 7  ;;  %v1246_v50 = vrot.slane %v1075_v31, 2  ;;  %v1189_v51 = vrot.slane %v1075_v31, 1 }
 0x6a5   :  { %v1134_v52 = vpack.c.b16 %v1133_v46, %v1133_v46  ;;  %v1360_v53 = vrot.slane %v1075_v31, 4  ;;  %v1303_v54 = vrot.slane %v1075_v31, 3  ;;  %v1474_v55 = vrot.slane %v1075_v31, 6 }
 0x6a6   :  { %v1077_v56 = vsel %vm271_vm3, %v1076_v47, %v1074_v28  ;;  %v1247_v58 = vsel %vm271_vm3, %v1246_v50, %v1245_v33  ;;  %v1190_v59 = vsel %vm271_vm3, %v1189_v51, %v1188_v37  ;;  %v1417_v60 = vrot.slane %v1075_v31, 5  ;;  %v2641_v28 = vld [vmem:[#allocation4 + $0x70] sm:$0xff]   ;;  %v2643_v31 = vld [vmem:[#allocation4 + $0x78] sm:$0xff]  }
 0x6a7   :  { %2467 = vmatmul.mubr.msk.bf16.vlgmr.msra.gmra.mrb[32].mxu0 %vm77_vm1, %v1134_v52  ;;  %v1078_v61 = vpack.c.b16 %v1077_v56, %v1077_v56  ;;  %v1361_v62 = vsel %vm271_vm3, %v1360_v53, %v1359_v42  ;;  %v1304_v1 = vsel %vm271_vm3, %v1303_v54, %v1302_v43  ;;  %v1475_v2 = vsel %vm271_vm3, %v1474_v55, %v1473_v44  ;;  %v2647_v33 = vld [vmem:[%s3096_s6 + $0x10] sm:$0xff]   ;;  %v2648_v37 = vld [vmem:[%s3096_s6 + $0x18] sm:$0xff]  }
 0x6a8   :  { %2477 = vmatpush3.bf16.msra.mxu0 %v2624_v48  ;;  %2478 = vmatprep.mubr.msk.bf16.mxu0 %vm2726_vm0, %v2725_v0  ;;  %v1418_v45 = vsel %vm271_vm3, %v1417_v60, %v1416_v63  ;;  %v1248_v7 = vpack.c.b16 %v1247_v58, %v1247_v58  ;;  %v1191_v10 = vpack.c.b16 %v1190_v59, %v1190_v59 }
 0x6a9   :  { %2461 = vmatmul.mubr.msk.bf16.vlgmr.msra.gmra.mrb[28].mxu1 %vm77_vm1, %v1078_v61  ;;  %2488 = vmatprep.subr.bf16.mxu0 %v2725_v0  ;;  %v1362_v12 = vpack.c.b16 %v1361_v62, %v1361_v62  ;;  %v1305_v14 = vpack.c.b16 %v1304_v1, %v1304_v1  ;;  %v1476_v16 = vpack.c.b16 %v1475_v2, %v1475_v2 }
 0x6aa   :  { %2471 = vmatpush3.bf16.msra.mxu1 %v2623_v57  ;;  %2472 = vmatprep.mubr.msk.bf16.mxu1 %vm2726_vm0, %v2725_v0  ;;  %v1419_v18 = vpack.c.b16 %v1418_v45, %v1418_v45  ;;  %v1931_v32 = vpack.c.b16 %v2871_v41, %v2871_v41  ;;  %v2646_v41 = vld [vmem:[%s3096_s6 + $0x8] sm:$0xff]  }
 0x6ab   :  { %2482 = vmatprep.subr.bf16.mxu1 %v2725_v0 }
 0x6af   :  { %2479 = vmatmul.mubr.msk.bf16.vlgmr.msra.gmra.mrb[36].mxu0 %vm77_vm1, %v1248_v7 }
 0x6b0   :  { %2489 = vmatpush3.bf16.msra.mxu0 %v2626_v5  ;;  %2490 = vmatprep.mubr.msk.bf16.mxu0 %vm2726_vm0, %v2725_v0 }
 0x6b1   :  { %2473 = vmatmul.mubr.msk.bf16.vlgmr.msra.gmra.mrb[32].mxu1 %vm77_vm1, %v1191_v10  ;;  %2500 = vmatprep.subr.bf16.mxu0 %v2725_v0 }
 0x6b2   :  { %2483 = vmatpush3.bf16.msra.mxu1 %v2625_v9  ;;  %2484 = vmatprep.mubr.msk.bf16.mxu1 %vm2726_vm0, %v2725_v0 }
 0x6b3   :  { %2494 = vmatprep.subr.bf16.mxu1 %v2725_v0 }
 0x6b7   :  { %2491 = vmatmul.mubr.msk.bf16.vlgmr.msra.gmra.mrb[40].mxu0 %vm77_vm1, %v1362_v12 }
 0x6b8   :  { %2501 = vmatpush3.bf16.msra.mxu0 %v2628_v11  ;;  %2502 = vmatprep.mubr.msk.bf16.mxu0 %vm2726_vm0, %v2725_v0 }
 0x6b9   :  { %2485 = vmatmul.mubr.msk.bf16.vlgmr.msra.gmra.mrb[36].mxu1 %vm77_vm1, %v1305_v14  ;;  %2514 = vmatprep.subr.bf16.mxu0 %v2725_v0 }
 0x6ba   :  { %2495 = vmatpush3.bf16.msra.mxu1 %v2627_v13  ;;  %2496 = vmatprep.mubr.msk.bf16.mxu1 %vm2726_vm0, %v2725_v0 }
 0x6bb   :  { %2506 = vmatprep.subr.bf16.mxu1 %v2725_v0 }
 0x6bf   :  { %2503 = vmatmul.mubr.msk.bf16.vlgmr.msra.gmra.mrb[44].mxu0 %vm77_vm1, %v1476_v16 }
 0x6c0   :  { %2515 = vmatpush3.bf16.msra.mxu0 %v2629_v15  ;;  %2518 = vmatprep.mubr.msk.bf16.mxu0 %vm2726_vm0, %v2725_v0 }
 0x6c1   :  { %2497 = vmatmul.mubr.msk.bf16.vlgmr.msra.gmra.mrb[40].mxu1 %vm77_vm1, %v1419_v18  ;;  %2516 = vmatprep.subr.bf16.mxu0 %v2725_v0 }
 0x6c2   :  { %2507 = vmatpush3.bf16.msra.mxu1 %v2630_v17  ;;  %2510 = vmatprep.mubr.msk.bf16.mxu1 %vm2726_vm0, %v2725_v0 }
 0x6c3   :  { %2508 = vmatprep.subr.bf16.mxu1 %v2725_v0 }
 0x6c4   :  { %2517 = vmatpush3.bf16.msra.mxu0 %v2631_v19  ;;  %v1528_v19 = vpop.permute.xlu1 %1527 }
 0x6c5   :  { %2530 = vmatprep.subr.bf16.mxu0 %v2725_v0 }
 0x6c6   :  { %2509 = vmatpush3.bf16.msra.mxu1 %v2632_v20 }
 0x6c7   :  { %2519 = vmatmul.mubr.msk.bf16.vlgmr.msra.gmra.mrb[48].mxu0 %vm139_vm2, %v1607_v22  ;;  %2522 = vmatprep.subr.bf16.mxu1 %v2725_v0 }
 0x6c8   :  { %2531 = vmatpush3.bf16.msra.mxu0 %v2633_v21  ;;  %2534 = vmatprep.mubr.msk.bf16.mxu0 %vm2726_vm0, %v2725_v0 }
 0x6c9   :  { %2511 = vmatmul.mubr.msk.bf16.vlgmr.msra.gmra.mrb[44].mxu1 %vm139_vm2, %v1549_v23  ;;  %2532 = vmatprep.subr.bf16.mxu0 %v2725_v0 }
 0x6ca   :  { %2523 = vmatpush3.bf16.msra.mxu1 %v2634_v49  ;;  %2526 = vmatprep.mubr.msk.bf16.mxu1 %vm2726_vm0, %v2725_v0 }
 0x6cb   :  { %2524 = vmatprep.subr.bf16.mxu1 %v2725_v0 }
 0x6cc   :  { %2533 = vmatpush3.bf16.msra.mxu0 %v2635_v24 }
 0x6cd   :  { %2546 = vmatprep.subr.bf16.mxu0 %v2725_v0 }
 0x6ce   :  { %2525 = vmatpush3.bf16.msra.mxu1 %v2636_v34 }
 0x6cf   :  { %2535 = vmatmul.mubr.msk.bf16.vlgmr.msra.gmra.mrb[52].mxu0 %vm139_vm2, %v1736_v27  ;;  %2538 = vmatprep.subr.bf16.mxu1 %v2725_v0 }
 0x6d0   :  { %2547 = vmatpush3.bf16.msra.mxu0 %v2637_v25  ;;  %2550 = vmatprep.mubr.msk.bf16.mxu0 %vm2726_vm0, %v2725_v0 }
 0x6d1   :  { %2527 = vmatmul.mubr.msk.bf16.vlgmr.msra.gmra.mrb[48].mxu1 %vm139_vm2, %v1671_v4  ;;  %2548 = vmatprep.subr.bf16.mxu0 %v2725_v0 }
 0x6d2   :  { %2539 = vmatpush3.bf16.msra.mxu1 %v2638_v3  ;;  %2542 = vmatprep.mubr.msk.bf16.mxu1 %vm2726_vm0, %v2725_v0 }
 0x6d3   :  { %2540 = vmatprep.subr.bf16.mxu1 %v2725_v0 }
 0x6d4   :  { %2549 = vmatpush3.bf16.msra.mxu0 %v2639_v26 }
 0x6d5   :  { %2562 = vmatprep.subr.bf16.mxu0 %v2725_v0 }
 0x6d6   :  { %2541 = vmatpush3.bf16.msra.mxu1 %v2640_v35 }
 0x6d7   :  { %2551 = vmatmul.mubr.msk.bf16.vlgmr.msra.gmra.mrb[56].mxu0 %vm139_vm2, %v1866_v36  ;;  %2554 = vmatprep.subr.bf16.mxu1 %v2725_v0 }
 0x6d8   :  { %2563 = vmatpush3.bf16.msra.mxu0 %v2641_v28  ;;  %2566 = vmatprep.mubr.msk.bf16.mxu0 %vm2726_vm0, %v2725_v0 }
 0x6d9   :  { %2543 = vmatmul.mubr.msk.bf16.vlgmr.msra.gmra.mrb[52].mxu1 %vm139_vm2, %v1801_v30  ;;  %2564 = vmatprep.subr.bf16.mxu0 %v2725_v0 }
 0x6da   :  { %2555 = vmatpush3.bf16.msra.mxu1 %v2642_v29  ;;  %2558 = vmatprep.mubr.msk.bf16.mxu1 %vm2726_vm0, %v2725_v0 }
 0x6db   :  { %2556 = vmatprep.subr.bf16.mxu1 %v2725_v0 }
 0x6dc   :  { %2565 = vmatpush3.bf16.msra.mxu0 %v2643_v31 }
 0x6dd   :  { %2578 = vmatprep.subr.bf16.mxu0 %v2725_v0 }
 0x6de   :  { %2557 = vmatpush3.bf16.msra.mxu1 %v2644_v38 }
 0x6df   :  { %2567 = vmatmul.mubr.msk.bf16.vlgmr.msra.gmra.mrb[60].mxu0 %vm139_vm2, %v1996_v39  ;;  %2570 = vmatprep.subr.bf16.mxu1 %v2725_v0 }
 0x6e0   :  { %2582 = vmatprep.mubr.msk.bf16.mxu0 %vm2726_vm0, %v2725_v0  ;;  %2579 = vmatpush3.bf16.msra.mxu0 %v2645_v40 }
 0x6e1   :  { %2559 = vmatmul.mubr.msk.bf16.vlgmr.msra.gmra.mrb[56].mxu1 %vm139_vm2, %v1931_v32  ;;  %2580 = vmatprep.subr.bf16.mxu0 %v2725_v0 }
 0x6e2   :  { %2574 = vmatprep.mubr.msk.bf16.mxu1 %vm2726_vm0, %v2725_v0  ;;  %2571 = vmatpush3.bf16.msra.mxu1 %v2647_v33 }
 0x6e3   :  { %2572 = vmatprep.subr.bf16.mxu1 %v2725_v0 }
 0x6e4   :  { %2581 = vmatpush3.bf16.msra.mxu0 %v2646_v41 }
 0x6e6   :  { %2573 = vmatpush3.bf16.msra.mxu1 %v2648_v37 }
 0x77a   :  { %v1178_v42 = vpop.f32.mrb[32].mxu0 }
 0x77b   :  { %v2468_v43 = vpop.f32.mrb[33].mxu0 }
 0x77c   :  { %v1122_v44 = vpop.f32.mrb[28].mxu1  ;;  %v1181_v46 = vpop.f32.mrb[34].mxu0 }
 0x77d   :  { %v1128_v47 = vadd.f32 %v1122_v44, %v2966_v6  ;;  %v2462_v48 = vpop.f32.mrb[29].mxu1  ;;  %v2469_v50 = vpop.f32.mrb[35].mxu0 }
 0x77e   :  { %v1125_v0 = vpop.f32.mrb[30].mxu1 }
 0x77f   :  { %v2463_v51 = vpop.f32.mrb[31].mxu1  ;;  %v1184_v52 = vadd.f32 %v1178_v42, %v1128_v47 }
 0x782   :  { %v1292_v53 = vpop.f32.mrb[36].mxu0 }
 0x783   :  { %v2480_v54 = vpop.f32.mrb[37].mxu0 }
 0x784   :  { %v1235_v55 = vpop.f32.mrb[32].mxu1  ;;  %v1295_v56 = vpop.f32.mrb[38].mxu0 }
 0x785   :  { %v1241_v57 = vadd.f32 %v1235_v55, %v1184_v52  ;;  %v2474_v58 = vpop.f32.mrb[33].mxu1  ;;  %v2481_v59 = vpop.f32.mrb[39].mxu0 }
 0x786   :  { %v1238_v60 = vpop.f32.mrb[34].mxu1 }
 0x787   :  { %v2475_v8 = vpop.f32.mrb[35].mxu1  ;;  %v1298_v61 = vadd.f32 %v1292_v53, %v1241_v57  ;;  %v2054_v60 = vpop.permute.xlu1 %2053 }
 0x78a   :  { %v1406_v62 = vpop.f32.mrb[40].mxu0 }
 0x78b   :  { %v2492_v63 = vpop.f32.mrb[41].mxu0 }
 0x78c   :  { %v1349_v1 = vpop.f32.mrb[36].mxu1  ;;  %v1409_v2 = vpop.f32.mrb[42].mxu0 }
 0x78d   :  { %v1355_v6 = vadd.f32 %v1349_v1, %v1298_v61  ;;  %v2486_v45 = vpop.f32.mrb[37].mxu1  ;;  %v2493_v5 = vpop.f32.mrb[43].mxu0 }
 0x78e   :  { %v1352_v7 = vpop.f32.mrb[38].mxu1 }
 0x78f   :  { %v2487_v9 = vpop.f32.mrb[39].mxu1  ;;  %v1412_v10 = vadd.f32 %v1406_v62, %v1355_v6 }
 0x790   :  { %v2179_v9 = vpop.permute.xlu1 %2178 }
 0x792   :  { %v1520_v11 = vpop.f32.mrb[44].mxu0 }
 0x793   :  { %v2504_v12 = vpop.f32.mrb[45].mxu0 }
 0x794   :  { %v1463_v13 = vpop.f32.mrb[40].mxu1  ;;  %v1523_v14 = vpop.f32.mrb[46].mxu0 }
 0x795   :  { %v1469_v15 = vadd.f32 %v1463_v13, %v1412_v10  ;;  %v2498_v16 = vpop.f32.mrb[41].mxu1  ;;  %v2505_v17 = vpop.f32.mrb[47].mxu0 }
 0x796   :  { %v1466_v18 = vpop.f32.mrb[42].mxu1 }
 0x797   :  { %v2499_v20 = vpop.f32.mrb[43].mxu1  ;;  %v1526_v21 = vadd.f32 %v1520_v11, %v1469_v15  ;;  %v2184_v15 = vpop.permute.xlu0 %2183 }
 0x799   :  { %v1530_v22 = vadd.f32 %v1528_v19, %v1526_v21  ;;  %v2285_v19 = vld [vmem:[%s3097_s7 + $0x1] ss:$0 sm:$0xff] }
 0x79a   :  { %v1657_v49 = vpop.f32.mrb[48].mxu0 }
 0x79b   :  { %v1531_v23 = vmax.f32 %v1530_v22, 0.0  ;;  %v2520_v24 = vpop.f32.mrb[49].mxu0 }
 0x79c   :  { %v1599_v34 = vpop.f32.mrb[44].mxu1  ;;  %v1660_v25 = vpop.f32.mrb[50].mxu0 }
 0x79d   :  { %v2066_v27 = vpack.c.bf16 %v1531_v23, %v1531_v23  ;;  %v1658_v3 = vadd.f32 %v1657_v49, %v1599_v34  ;;  %v2512_v4 = vpop.f32.mrb[45].mxu1  ;;  %v2521_v26 = vpop.f32.mrb[51].mxu0 }
 0x79e   :  { %v1602_v35 = vpop.f32.mrb[46].mxu1 }
 0x79f   :  { %v2513_v28 = vpop.f32.mrb[47].mxu1  ;;  %2583 = vmatmul.mubr.msk.bf16.vlgmr.msra.gmra.mrb[64].mxu0 %vm139_vm2, %v2066_v27 }
 0x7a2   :  { %v1786_v36 = vpop.f32.mrb[52].mxu0 }
 0x7a3   :  { %v2536_v29 = vpop.f32.mrb[53].mxu0 }
 0x7a4   :  { %v1721_v30 = vpop.f32.mrb[48].mxu1  ;;  %v1789_v31 = vpop.f32.mrb[54].mxu0 }
 0x7a5   :  { %v1727_v38 = vadd.f32 %v1721_v30, %v1658_v3  ;;  %v2528_v39 = vpop.f32.mrb[49].mxu1  ;;  %v2537_v32 = vpop.f32.mrb[55].mxu0 }
 0x7a6   :  { %v1724_v40 = vpop.f32.mrb[50].mxu1 }
 0x7a7   :  { %v2529_v41 = vpop.f32.mrb[51].mxu1  ;;  %v1792_v33 = vadd.f32 %v1786_v36, %v1727_v38 }
 0x7aa   :  { %v1916_v37 = vpop.f32.mrb[56].mxu0 }
 0x7ab   :  { %v2552_v42 = vpop.f32.mrb[57].mxu0 }
 0x7ac   :  { %v1851_v43 = vpop.f32.mrb[52].mxu1  ;;  %v1919_v44 = vpop.f32.mrb[58].mxu0 }
 0x7ad   :  { %v1857_v46 = vadd.f32 %v1851_v43, %v1792_v33  ;;  %v2544_v47 = vpop.f32.mrb[53].mxu1  ;;  %v2553_v48 = vpop.f32.mrb[59].mxu0 }
 0x7ae   :  { %v1854_v50 = vpop.f32.mrb[54].mxu1 }
 0x7af   :  { %v2545_v0 = vpop.f32.mrb[55].mxu1  ;;  %v1922_v51 = vadd.f32 %v1916_v37, %v1857_v46 }
 0x7b2   :  { %v2046_v52 = vpop.f32.mrb[60].mxu0 }
 0x7b3   :  { %v2568_v53 = vpop.f32.mrb[61].mxu0 }
 0x7b4   :  { %v1981_v54 = vpop.f32.mrb[56].mxu1  ;;  %v2049_v55 = vpop.f32.mrb[62].mxu0 }
 0x7b5   :  { %v1987_v56 = vadd.f32 %v1981_v54, %v1922_v51  ;;  %v2560_v57 = vpop.f32.mrb[57].mxu1  ;;  %v2569_v58 = vpop.f32.mrb[63].mxu0 }
 0x7b6   :  { %v1984_v59 = vpop.f32.mrb[58].mxu1 }
 0x7b7   :  { %v2561_v8 = vpop.f32.mrb[59].mxu1  ;;  %v2052_v61 = vadd.f32 %v2046_v52, %v1987_v56 }
 0x7b9   :  { %v2056_v62 = vadd.f32 %v2054_v60, %v2052_v61 }
 0x7bb   :  { %v2057_v63 = vmax.f32 %v2056_v62, 0.0 }
 0x7bd   :  { %v2067_v1 = vpack.c.bf16 %v2057_v63, %v2057_v63 }
 0x7bf   :  { %2575 = vmatmul.mubr.msk.bf16.vlgmr.msra.gmra.mrb[60].mxu1 %vm139_vm2, %v2067_v1 }
 0x872   :  { %v2172_v2 = vpop.f32.mrb[64].mxu0 }
 0x873   :  { %v2584_v6 = vpop.f32.mrb[65].mxu0 }
 0x874   :  { %v2175_v45 = vpop.f32.mrb[66].mxu0 }
 0x875   :  { %v2585_v5 = vpop.f32.mrb[67].mxu0 }
 0x892   :  { %v2117_v7 = vpop.f32.mrb[60].mxu1 }
 0x893   :  { %v2173_v10 = vadd.f32 %v2172_v2, %v2117_v7  ;;  %v2576_v11 = vpop.f32.mrb[61].mxu1 }
 0x894   :  { %v2120_v12 = vpop.f32.mrb[62].mxu1 }
 0x895   :  { %v2181_v13 = vadd.f32 %v2179_v9, %v2173_v10  ;;  %v2577_v14 = vpop.f32.mrb[63].mxu1 }
 0x897   :  { %v2182_v16 = vmax.f32 %v2181_v13, 0.0 }
 0x899   :  { %v2186_v17 = vmul.f32 %v2184_v15, %v2182_v16 }
 0x89b   :  { %v2188_v18 = vsel %vm2187_vm14, %v2186_v17, 0.0 }
 0x89c   :  { %2189 = vadd.xlane.f32.xlu1 %v2188_v18 }
 0x929   :  { %v2190_v20 = vpop.xlane.xlu1 %2189 }
 0x92a   :  { %v2197_v21 = vadd.f32 %v2285_v19, %v2190_v20 }
 0x92c   :  { %2199 = vst.msk [vmem:[%s3098_s8] sm:$0x3] %vm2198_vm15, %v2197_v21 }
 0x92d   :  { %2204 = vsyncpa [#allocation3], 1 }
 0x92e   :  { %2205 = vsyncpa [#allocation5], 1 }

</bundles_post_ra>
